<compile_context>
chip_gen: v7x
topology: tpu7x:2x2x1
jax: 0.10.0
libtpu: 0.0.40
codegen_flags: <defaults>
</compile_context>

<pallas_src>
import functools
import math

import jax
import jax.numpy as jnp
from jax.experimental import pallas as pl
from jax.experimental.pallas import tpu as pltpu


# ----------------------------- helpers -----------------------------

def _vmem():
    return pl.BlockSpec(memory_space=pltpu.MemorySpace.VMEM)


def _round_up(x, m):
    return (x + m - 1) // m * m


def _ln(x, g, b, eps):
    """LayerNorm over last axis, f32 math."""
    mu = jnp.mean(x, axis=-1, keepdims=True)
    xc = x - mu
    var = jnp.mean(xc * xc, axis=-1, keepdims=True)
    return xc * jax.lax.rsqrt(var + eps) * g + b


def _gelu(y):
    # TODO(synk): HF RoBERTa uses exact erf-GELU; tanh approximation kept since erf lowering
    # in Mosaic is not guaranteed on all versions.
    return 0.5 * y * (1.0 + jnp.tanh(0.7978845608028654 * (y + 0.044715 * y * y * y)))


# ----------------------------- fused encoder stack -----------------------------

def _encoder_stack_kernel(emb_ref, mask_ref, embg_ref, embb_ref,
                          wqkv_ref, bqkv_ref, wo_ref, bo_ref,
                          ln1g_ref, ln1b_ref, wff1_ref, bff1_ref,
                          wff2_ref, bff2_ref, ln2g_ref, ln2b_ref,
                          o_ref, *, B, S, heads, dh, eps):
    """Grid=(layers,). One full RoBERTa encoder layer per grid step; residual stream stays
    resident in the output VMEM block across all layers."""
    H = heads * dh

    # Layer 0: fold the embedding LayerNorm into the first grid step (no extra HBM round
    # trip for the embedding activation, no separate LN kernel launch).
    @pl.when(pl.program_id(0) == 0)
    def _():
        e = emb_ref[...].astype(jnp.float32)
        o_ref[...] = _ln(e, embg_ref[...], embb_ref[...], eps).astype(o_ref.dtype)

    x_bf = o_ref[...]                       # (B*S, H) bf16 residual stream (VMEM-resident)
    x = x_bf.astype(jnp.float32)

    # Fused QKV projection: single lane-dense (H, 3H) bf16 MXU pass, f32 accumulation.
    qkv = jnp.dot(x_bf, wqkv_ref[...], preferred_element_type=jnp.float32) + bqkv_ref[...]

    scale = 1.0 / math.sqrt(dh)

    def split_heads(y2d):                   # (B*S, H) -> (B*heads, S, dh)
        return jnp.swapaxes(y2d.reshape(B, S, heads, dh), 1, 2).reshape(B * heads, S, dh)

    # bf16 operands for both attention matmuls, all heads batched in one MXU stream.
    q = split_heads((qkv[:, :H] * scale).astype(jnp.bfloat16))
    k = split_heads(qkv[:, H:2 * H].astype(jnp.bfloat16))
    v = split_heads(qkv[:, 2 * H:].astype(jnp.bfloat16))

    s = jnp.einsum("bqd,bkd->bqk", q, k, preferred_element_type=jnp.float32)
    # One broadcast of the (B,1,S) additive padding mask over all heads/queries.
    s = s.reshape(B, heads, S, S) + mask_ref[...][:, None, :, :]
    s = s - jnp.max(s, axis=-1, keepdims=True)          # stable softmax
    p = jnp.exp(s)
    inv = pl.reciprocal(jnp.sum(p, axis=-1, keepdims=True), approx=True)   # EUP, not VALU div

    ctx = jnp.einsum("bqk,bkd->bqd",
                     p.astype(jnp.bfloat16).reshape(B * heads, S, S), v,
                     preferred_element_type=jnp.float32)
    ctx = ctx.reshape(B, heads, S, dh) * inv
    ctx = jnp.swapaxes(ctx, 1, 2).reshape(B * S, H)

    # Single full-K output projection (no per-head K=dh matmuls).
    attn = jnp.dot(ctx.astype(jnp.bfloat16), wo_ref[...],
                   preferred_element_type=jnp.float32) + bo_ref[...]

    x1 = _ln(attn + x, ln1g_ref[...], ln1b_ref[...], eps)

    # FFN (lane-dense intermediate), bf16 operands, f32 accumulation.
    ff = jnp.dot(x1.astype(jnp.bfloat16), wff1_ref[...],
                 preferred_element_type=jnp.float32) + bff1_ref[...]
    ff = _gelu(ff)
    ff = jnp.dot(ff.astype(jnp.bfloat16), wff2_ref[...],
                 preferred_element_type=jnp.float32) + bff2_ref[...]

    x2 = _ln(ff + x1, ln2g_ref[...], ln2b_ref[...], eps)
    o_ref[...] = x2.astype(o_ref.dtype)


def encoder_stack(emb2d, add_mask, params, cfg, B, S):
    H, I, L, heads = cfg.hidden, cfg.intermediate, cfg.layers, cfg.heads
    enc = params["enc"]

    def fixed(shape):
        # Same block for every layer step -> DMA'd once, stays resident.
        return pl.BlockSpec(shape, lambda l, _s=shape: (0,) * len(_s))

    def per_layer(shape):
        # Per-layer stacked weight; leading layer axis squeezed out of the kernel ref.
        return pl.BlockSpec((None,) + shape, lambda l, _s=shape: (l,) + (0,) * len(_s))

    flops = 2 * B * S * (4 * H * H + 2 * S * H + 2 * H * I) * L
    transcendentals = (B * heads * S * S + B * S * I) * L
    bytes_accessed = (B * S * H * 4 + B * S * H * 2 + B * S * 4
                      + L * 2 * (3 * H * H + H * H + 2 * H * I)
                      + L * 4 * (3 * H + 6 * H + I))

    kernel = functools.partial(_encoder_stack_kernel, B=B, S=S, heads=heads,
                               dh=H // heads, eps=cfg.ln_eps)
    return pl.pallas_call(
        kernel,
        out_shape=jax.ShapeDtypeStruct((B * S, H), jnp.bfloat16),
        grid_spec=pltpu.PrefetchScalarGridSpec(
            num_scalar_prefetch=0,
            grid=(L,),
            in_specs=[
                fixed((B * S, H)),                 # embeddings (pre-LN, f32)
                fixed((B, 1, S)),                  # additive padding mask
                fixed((1, H)), fixed((1, H)),      # embedding LN gamma/beta
                per_layer((H, 3 * H)), per_layer((1, 3 * H)),   # QKV
                per_layer((H, H)), per_layer((1, H)),           # out-proj
                per_layer((1, H)), per_layer((1, H)),           # LN1
                per_layer((H, I)), per_layer((1, I)),           # FFN up
                per_layer((I, H)), per_layer((1, H)),           # FFN down
                per_layer((1, H)), per_layer((1, H)),           # LN2
            ],
            out_specs=pl.BlockSpec((B * S, H), lambda l: (0, 0)),
        ),
        compiler_params=pltpu.CompilerParams(
            dimension_semantics=("arbitrary",),
            vmem_limit_bytes=32 * 1024 * 1024),
        cost_estimate=pl.CostEstimate(flops=flops,
                                      transcendentals=transcendentals,
                                      bytes_accessed=bytes_accessed),
    )(emb2d, add_mask, params["emb_ln_g"], params["emb_ln_b"],
      enc["wqkv"], enc["bqkv"], enc["wo"], enc["bo"],
      enc["ln1_g"], enc["ln1_b"], enc["wff1"], enc["bff1"],
      enc["wff2"], enc["bff2"], enc["ln2_g"], enc["ln2_b"])


# ----------------------------- fused pooler + MLP head -----------------------------

def _pooler_head_kernel(x_ref, wp_ref, bp_ref, *refs, n_pairs, B, S):
    """RoBERTa pooler (tanh on [CLS]) + MLP classification head, fully fused.
    [CLS] rows are extracted in-kernel (no XLA gather / extra HBM array)."""
    o_ref = refs[-1]
    H = x_ref.shape[1]
    cls = x_ref[...].reshape(B, S, H)[:, 0, :]       # (B, H) bf16 [CLS] rows
    y = jnp.dot(cls, wp_ref[...], preferred_element_type=jnp.float32) + bp_ref[...]
    y = jnp.tanh(y)
    # text_dropout(p=0.5): identity at inference.
    for i in range(n_pairs):
        w_ref = refs[2 * i]
        b_ref = refs[2 * i + 1]
        y = jnp.dot(y.astype(jnp.bfloat16), w_ref[...],
                    preferred_element_type=jnp.float32) + b_ref[...]
        if i < n_pairs - 1:
            y = jnp.maximum(y, 0.0)                  # activation='relu'
    o_ref[...] = y                                   # lane-dense (B, 128) store


def pooler_head(x2d, params, cfg, B, S):
    head = params["head"]
    args = [x2d, params["w_pool"], params["b_pool"]]
    for w, b in head:
        args.extend([w, b])
    out_lanes = head[-1][0].shape[1]                 # padded to a multiple of 128
    kernel = functools.partial(_pooler_head_kernel, n_pairs=len(head), B=B, S=S)
    logits_pad = pl.pallas_call(
        kernel,
        out_shape=jax.ShapeDtypeStruct((B, out_lanes), jnp.float32),
        in_specs=[_vmem()] * len(args),
        out_specs=_vmem(),
    )(*args)
    return logits_pad[:, :cfg.n_classes]


# ----------------------------- Model definition -----------------------------

class Cfg:
    vocab_size = 100
    hidden = 64            # text_hidden_size (small synthetic RoBERTa)
    layers = 2             # transformer layers
    heads = 4
    intermediate = 128
    max_pos = 24
    pad_token_id = 1       # RoBERTa padding_idx
    n_classes = 4
    head_hidden = 128      # head_hidden_size (module default; lane-dense)
    head_layers = 2        # head_hidden_layers (small)
    ln_eps = 1e-5


def init_params(key, cfg):
    keys = iter(jax.random.split(key, 64))

    def nrm(shape, scale=0.02, dtype=jnp.bfloat16):
        return (scale * jax.random.normal(next(keys), shape, jnp.float32)).astype(dtype)

    H, I, L = cfg.hidden, cfg.intermediate, cfg.layers
    p = {
        "word_emb": nrm((cfg.vocab_size, H), dtype=jnp.float32),
        "pos_emb": nrm((cfg.max_pos, H), dtype=jnp.float32),
        "type_emb": nrm((1, H), dtype=jnp.float32),
        "emb_ln_g": jnp.ones((1, H), jnp.float32),
        "emb_ln_b": jnp.zeros((1, H), jnp.float32),
    }

    # Per-layer weights stacked along a leading layer axis (selected by index_map).
    p["enc"] = {
        # fused QKV weight per layer: [Wq | Wk | Wv] along the output (lane) axis,
        # heads concatenated along lanes within each.
        "wqkv": nrm((L, H, 3 * H)),
        "bqkv": jnp.zeros((L, 1, 3 * H), jnp.float32),
        "wo": nrm((L, H, H)),
        "bo": jnp.zeros((L, 1, H), jnp.float32),
        "ln1_g": jnp.ones((L, 1, H), jnp.float32),
        "ln1_b": jnp.zeros((L, 1, H), jnp.float32),
        "wff1": nrm((L, H, I)),
        "bff1": jnp.zeros((L, 1, I), jnp.float32),
        "wff2": nrm((L, I, H)),
        "bff2": jnp.zeros((L, 1, H), jnp.float32),
        "ln2_g": jnp.ones((L, 1, H), jnp.float32),
        "ln2_b": jnp.zeros((L, 1, H), jnp.float32),
    }

    p["w_pool"] = nrm((H, H))
    p["b_pool"] = jnp.zeros((1, H), jnp.float32)

    # MLPClassificationHead: Linear(H, hh) + relu, (head_layers-1) x [Linear(hh, hh) + relu],
    # Linear(hh, n_classes).  Kaiming-style init (initialisation='kaiming_normal').
    head = []
    dims = [H] + [cfg.head_hidden] * cfg.head_layers + [cfg.n_classes]
    for idx, (din, dout) in enumerate(zip(dims[:-1], dims[1:])):
        w = jax.random.normal(next(keys), (din, dout), jnp.float32) * math.sqrt(2.0 / din)
        if idx == len(dims) - 2:
            # Pad the final classifier to a lane-dense 128-wide output (wrapper slices back
            # to n_classes) so the logits store is an unmasked vst.
            pad = _round_up(dout, 128) - dout
            w = jnp.pad(w, ((0, 0), (0, pad)))
            dout = dout + pad
        head.append((w.astype(jnp.bfloat16), jnp.zeros((1, dout), jnp.float32)))
    p["head"] = head
    return p


def forward(params, input_ids, attention_mask, cfg):
    B, S = input_ids.shape
    H = cfg.hidden

    # ---- RoBERTa embeddings (gathers are XLA glue; the embedding LN is fused into the
    # first grid step of the encoder kernel) ----
    # Position ids per HF create_position_ids_from_input_ids (pad tokens get padding_idx).
    pad_mask = (input_ids != cfg.pad_token_id).astype(jnp.int32)
    pos_ids = jnp.cumsum(pad_mask, axis=1) * pad_mask + cfg.pad_token_id
    emb = (jnp.take(params["word_emb"], input_ids, axis=0)
           + jnp.take(params["pos_emb"], pos_ids, axis=0)
           + params["type_emb"][0]).astype(jnp.float32)          # token_type_ids = 0
    # hidden_dropout: identity at inference.

    # Additive padding mask, (B, 1, S); broadcast across heads/queries once inside the kernel.
    add_mask = ((1.0 - attention_mask.astype(jnp.float32)) * -1e9).reshape(B, 1, S)

    # ---- Encoder: ONE fused pallas_call, grid over layers ----
    x = encoder_stack(emb.reshape(B * S, H), add_mask, params, cfg, B, S)

    # ---- Pooler (tanh on in-kernel-extracted [CLS]) + text_dropout (identity) + MLP head ----
    logits = pooler_head(x, params, cfg, B, S)
    return {"logits": logits}


# ----------------------------- Main -----------------------------

if __name__ == "__main__":
    cfg = Cfg()
    key = jax.random.PRNGKey(0)
    k_params, k_ids = jax.random.split(key)
    params = init_params(k_params, cfg)

    B, S = 2, 8
    input_ids = jax.random.randint(k_ids, (B, S), 2, cfg.vocab_size, dtype=jnp.int32)
    attention_mask = jnp.ones((B, S), dtype=jnp.int32)

    fwd = jax.jit(lambda p, ids, m: forward(p, ids, m, cfg))
    out = fwd(params, input_ids, attention_mask)
    logits = jax.block_until_ready(out["logits"])
    assert logits.shape == (B, cfg.n_classes)
    assert bool(jnp.all(jnp.isfinite(logits)))
    print("KERNEL_OK")
</pallas_src>

<mosaic_0001>
module attributes {stable_mosaic.version = 11 : i64} {
  func.func @_encoder_stack_kernel(%arg0: i32, %arg1: memref<16x64xf32, #tpu.memory_space<vmem>>, %arg2: memref<2x1x8xf32, #tpu.memory_space<vmem>>, %arg3: memref<1x64xf32, #tpu.memory_space<vmem>>, %arg4: memref<1x64xf32, #tpu.memory_space<vmem>>, %arg5: memref<1x64x192xbf16, #tpu.memory_space<vmem>>, %arg6: memref<1x1x192xf32, #tpu.memory_space<vmem>>, %arg7: memref<1x64x64xbf16, #tpu.memory_space<vmem>>, %arg8: memref<1x1x64xf32, #tpu.memory_space<vmem>>, %arg9: memref<1x1x64xf32, #tpu.memory_space<vmem>>, %arg10: memref<1x1x64xf32, #tpu.memory_space<vmem>>, %arg11: memref<1x64x128xbf16, #tpu.memory_space<vmem>>, %arg12: memref<1x1x128xf32, #tpu.memory_space<vmem>>, %arg13: memref<1x128x64xbf16, #tpu.memory_space<vmem>>, %arg14: memref<1x1x64xf32, #tpu.memory_space<vmem>>, %arg15: memref<1x1x64xf32, #tpu.memory_space<vmem>>, %arg16: memref<1x1x64xf32, #tpu.memory_space<vmem>>, %arg17: memref<16x64xbf16, #tpu.memory_space<vmem>>) attributes {dimension_semantics = [#tpu.dimension_semantics<arbitrary>], iteration_bounds = array<i64: 2>, scalar_prefetch = 0 : i64, scratch_operands = 0 : i64, tpu.core_type = #tpu.core_type<tc>, window_params = [{pipeline_mode = #tpu.pipeline_mode<synchronous>, transform_indices = @transform_0, window_bounds = array<i64: 16, 64>}, {pipeline_mode = #tpu.pipeline_mode<synchronous>, transform_indices = @transform_1, window_bounds = array<i64: 2, 1, 8>}, {pipeline_mode = #tpu.pipeline_mode<synchronous>, transform_indices = @transform_2, window_bounds = array<i64: 1, 64>}, {pipeline_mode = #tpu.pipeline_mode<synchronous>, transform_indices = @transform_3, window_bounds = array<i64: 1, 64>}, {transform_indices = @transform_4, window_bounds = array<i64: 1, 64, 192>}, {transform_indices = @transform_5, window_bounds = array<i64: 1, 1, 192>}, {transform_indices = @transform_6, window_bounds = array<i64: 1, 64, 64>}, {transform_indices = @transform_7, window_bounds = array<i64: 1, 1, 64>}, {transform_indices = @transform_8, window_bounds = array<i64: 1, 1, 64>}, {transform_indices = @transform_9, window_bounds = array<i64: 1, 1, 64>}, {transform_indices = @transform_10, window_bounds = array<i64: 1, 64, 128>}, {transform_indices = @transform_11, window_bounds = array<i64: 1, 1, 128>}, {transform_indices = @transform_12, window_bounds = array<i64: 1, 128, 64>}, {transform_indices = @transform_13, window_bounds = array<i64: 1, 1, 64>}, {transform_indices = @transform_14, window_bounds = array<i64: 1, 1, 64>}, {transform_indices = @transform_15, window_bounds = array<i64: 1, 1, 64>}, {pipeline_mode = #tpu.pipeline_mode<synchronous>, transform_indices = @transform_16, window_bounds = array<i64: 16, 64>}]} {
    %c0_i32 = arith.constant 0 : i32
    %0 = arith.cmpi eq, %arg0, %c0_i32 : i32
    %1 = arith.extui %0 : i1 to i32
    %c0_i32_0 = arith.constant 0 : i32
    %2 = arith.cmpi ne, %1, %c0_i32_0 : i32
    scf.if %2 {
      %c0_65 = arith.constant 0 : index
      %c0_66 = arith.constant 0 : index
      %140 = vector.load %arg1[%c0_65, %c0_66] : memref<16x64xf32, #tpu.memory_space<vmem>>, vector<16x64xf32>
      %c0_67 = arith.constant 0 : index
      %c0_68 = arith.constant 0 : index
      %141 = vector.load %arg3[%c0_67, %c0_68] : memref<1x64xf32, #tpu.memory_space<vmem>>, vector<1x64xf32>
      %c0_69 = arith.constant 0 : index
      %c0_70 = arith.constant 0 : index
      %142 = vector.load %arg4[%c0_69, %c0_70] : memref<1x64xf32, #tpu.memory_space<vmem>>, vector<1x64xf32>
      %cst_71 = arith.constant dense<0.000000e+00> : vector<16xf32>
      %143 = vector.multi_reduction <add>, %140, %cst_71 [1] : vector<16x64xf32> to vector<16xf32>
      %144 = vector.shape_cast %143 : vector<16xf32> to vector<16x1xf32>
      %cst_72 = arith.constant 6.400000e+01 : f32
      %145 = vector.broadcast %cst_72 : f32 to vector<16x1xf32>
      %146 = arith.divf %144, %145 : vector<16x1xf32>
      %147 = vector.broadcast %146 : vector<16x1xf32> to vector<16x64xf32>
      %148 = arith.subf %140, %147 : vector<16x64xf32>
      %149 = arith.mulf %148, %148 : vector<16x64xf32>
      %cst_73 = arith.constant dense<0.000000e+00> : vector<16xf32>
      %150 = vector.multi_reduction <add>, %149, %cst_73 [1] : vector<16x64xf32> to vector<16xf32>
      %151 = vector.shape_cast %150 : vector<16xf32> to vector<16x1xf32>
      %cst_74 = arith.constant 6.400000e+01 : f32
      %152 = vector.broadcast %cst_74 : f32 to vector<16x1xf32>
      %153 = arith.divf %151, %152 : vector<16x1xf32>
      %cst_75 = arith.constant 9.99999974E-6 : f32
      %154 = vector.broadcast %cst_75 : f32 to vector<16x1xf32>
      %155 = arith.addf %153, %154 : vector<16x1xf32>
      %156 = math.rsqrt %155 : vector<16x1xf32>
      %157 = vector.broadcast %156 : vector<16x1xf32> to vector<16x64xf32>
      %158 = arith.mulf %148, %157 : vector<16x64xf32>
      %159 = vector.broadcast %141 : vector<1x64xf32> to vector<16x64xf32>
      %160 = arith.mulf %158, %159 : vector<16x64xf32>
      %161 = vector.broadcast %142 : vector<1x64xf32> to vector<16x64xf32>
      %162 = arith.addf %160, %161 : vector<16x64xf32>
      %163 = arith.truncf %162 : vector<16x64xf32> to vector<16x64xbf16>
      %c0_76 = arith.constant 0 : index
      %c0_77 = arith.constant 0 : index
      %164 = vector.load %arg17[%c0_76, %c0_77] : memref<16x64xbf16, #tpu.memory_space<vmem>>, vector<16x64xbf16>
      tpu.vector_store %arg17[%c0_76, %c0_77], %163 {strides = array<i32>} : memref<16x64xbf16, #tpu.memory_space<vmem>>, vector<16x64xbf16>,
    } else {
    }
    %c0 = arith.constant 0 : index
    %c0_1 = arith.constant 0 : index
    %3 = vector.load %arg17[%c0, %c0_1] : memref<16x64xbf16, #tpu.memory_space<vmem>>, vector<16x64xbf16>
    %4 = arith.extf %3 : vector<16x64xbf16> to vector<16x64xf32>
    %c0_2 = arith.constant 0 : index
    %c0_3 = arith.constant 0 : index
    %c0_4 = arith.constant 0 : index
    %5 = vector.load %arg5[%c0_2, %c0_3, %c0_4] : memref<1x64x192xbf16, #tpu.memory_space<vmem>>, vector<1x64x192xbf16>
    %6 = vector.shape_cast %5 : vector<1x64x192xbf16> to vector<64x192xbf16>
    %cst = arith.constant dense<0.000000e+00> : vector<16x192xf32>
    %7 = tpu.matmul %3, %6, %cst {dimension_numbers = #tpu.dot_dimension_numbers<[1], [0], [0], [1], [0, 0, 1, 1], [], []>} : vector<16x64xbf16>, vector<64x192xbf16>, vector<16x192xf32> -> vector<16x192xf32>
    %c0_5 = arith.constant 0 : index
    %c0_6 = arith.constant 0 : index
    %c0_7 = arith.constant 0 : index
    %8 = vector.load %arg6[%c0_5, %c0_6, %c0_7] : memref<1x1x192xf32, #tpu.memory_space<vmem>>, vector<1x1x192xf32>
    %9 = vector.shape_cast %8 : vector<1x1x192xf32> to vector<1x192xf32>
    %10 = vector.broadcast %9 : vector<1x192xf32> to vector<16x192xf32>
    %11 = arith.addf %7, %10 : vector<16x192xf32>
    %12 = vector.extract_strided_slice %11 {offsets = [0, 0], sizes = [16, 64], strides = [1, 1]} : vector<16x192xf32> to vector<16x64xf32>
    %cst_8 = arith.constant 2.500000e-01 : f32
    %13 = vector.broadcast %cst_8 : f32 to vector<16x64xf32>
    %14 = arith.mulf %12, %13 : vector<16x64xf32>
    %15 = arith.truncf %14 : vector<16x64xf32> to vector<16x64xbf16>
    %16 = vector.shape_cast %15 : vector<16x64xbf16> to vector<2x8x4x16xbf16>
    %17 = tpu.transpose %16, [0, 2, 1, 3] : vector<2x8x4x16xbf16> -> vector<2x4x8x16xbf16>
    %18 = vector.shape_cast %17 : vector<2x4x8x16xbf16> to vector<8x8x16xbf16>
    %19 = vector.extract_strided_slice %11 {offsets = [0, 64], sizes = [16, 64], strides = [1, 1]} : vector<16x192xf32> to vector<16x64xf32>
    %20 = arith.truncf %19 : vector<16x64xf32> to vector<16x64xbf16>
    %21 = vector.shape_cast %20 : vector<16x64xbf16> to vector<2x8x4x16xbf16>
    %22 = tpu.transpose %21, [0, 2, 1, 3] : vector<2x8x4x16xbf16> -> vector<2x4x8x16xbf16>
    %23 = vector.shape_cast %22 : vector<2x4x8x16xbf16> to vector<8x8x16xbf16>
    %24 = vector.extract_strided_slice %11 {offsets = [0, 128], sizes = [16, 64], strides = [1, 1]} : vector<16x192xf32> to vector<16x64xf32>
    %25 = arith.truncf %24 : vector<16x64xf32> to vector<16x64xbf16>
    %26 = vector.shape_cast %25 : vector<16x64xbf16> to vector<2x8x4x16xbf16>
    %27 = tpu.transpose %26, [0, 2, 1, 3] : vector<2x8x4x16xbf16> -> vector<2x4x8x16xbf16>
    %28 = vector.shape_cast %27 : vector<2x4x8x16xbf16> to vector<8x8x16xbf16>
    "tpu.trace_start"() <{level = 10 : i32, message = "bqd,bkd->bqk"}> : () -> ()
    %cst_9 = arith.constant dense<0.000000e+00> : vector<8x8x8xf32>
    %29 = tpu.matmul %18, %23, %cst_9 {dimension_numbers = #tpu.dot_dimension_numbers<[2], [2], [1], [1], [0, 0, 0, 1, 1, 1], [0], [0]>} : vector<8x8x16xbf16>, vector<8x8x16xbf16>, vector<8x8x8xf32> -> vector<8x8x8xf32>
    "tpu.trace_stop"() : () -> ()
    %30 = vector.shape_cast %29 : vector<8x8x8xf32> to vector<2x4x8x8xf32>
    %c0_10 = arith.constant 0 : index
    %c0_11 = arith.constant 0 : index
    %c0_12 = arith.constant 0 : index
    %31 = vector.load %arg2[%c0_10, %c0_11, %c0_12] : memref<2x1x8xf32, #tpu.memory_space<vmem>>, vector<2x1x8xf32>
    %32 = vector.shape_cast %31 : vector<2x1x8xf32> to vector<2x1x1x8xf32>
    %33 = vector.broadcast %32 : vector<2x1x1x8xf32> to vector<2x4x8x8xf32>
    %34 = arith.addf %30, %33 : vector<2x4x8x8xf32>
    %cst_13 = arith.constant dense<0xFF800000> : vector<2x4x8xf32>
    %35 = vector.multi_reduction <maximumf>, %34, %cst_13 [3] : vector<2x4x8x8xf32> to vector<2x4x8xf32>
    %36 = vector.shape_cast %35 : vector<2x4x8xf32> to vector<2x4x8x1xf32>
    %37 = vector.broadcast %36 : vector<2x4x8x1xf32> to vector<2x4x8x8xf32>
    %38 = arith.subf %34, %37 : vector<2x4x8x8xf32>
    %39 = math.exp %38 : vector<2x4x8x8xf32>
    %cst_14 = arith.constant dense<0.000000e+00> : vector<2x4x8xf32>
    %40 = vector.multi_reduction <add>, %39, %cst_14 [3] : vector<2x4x8x8xf32> to vector<2x4x8xf32>
    %41 = vector.shape_cast %40 : vector<2x4x8xf32> to vector<2x4x8x1xf32>
    %42 = tpu.reciprocal %41 {approx = true} : vector<2x4x8x1xf32> -> vector<2x4x8x1xf32>
    %43 = arith.truncf %39 : vector<2x4x8x8xf32> to vector<2x4x8x8xbf16>
    %44 = vector.shape_cast %43 : vector<2x4x8x8xbf16> to vector<8x8x8xbf16>
    "tpu.trace_start"() <{level = 10 : i32, message = "bqk,bkd->bqd"}> : () -> ()
    %cst_15 = arith.constant dense<0.000000e+00> : vector<8x8x16xf32>
    %45 = tpu.matmul %44, %28, %cst_15 {dimension_numbers = #tpu.dot_dimension_numbers<[2], [1], [1], [2], [0, 0, 0, 1, 1, 2], [0], [0]>} : vector<8x8x8xbf16>, vector<8x8x16xbf16>, vector<8x8x16xf32> -> vector<8x8x16xf32>
    "tpu.trace_stop"() : () -> ()
    %46 = vector.shape_cast %45 : vector<8x8x16xf32> to vector<2x4x8x16xf32>
    %47 = vector.broadcast %42 : vector<2x4x8x1xf32> to vector<2x4x8x16xf32>
    %48 = arith.mulf %46, %47 : vector<2x4x8x16xf32>
    %49 = tpu.transpose %48, [0, 2, 1, 3] : vector<2x4x8x16xf32> -> vector<2x8x4x16xf32>
    %50 = vector.shape_cast %49 : vector<2x8x4x16xf32> to vector<16x64xf32>
    %51 = arith.truncf %50 : vector<16x64xf32> to vector<16x64xbf16>
    %c0_16 = arith.constant 0 : index
    %c0_17 = arith.constant 0 : index
    %c0_18 = arith.constant 0 : index
    %52 = vector.load %arg7[%c0_16, %c0_17, %c0_18] : memref<1x64x64xbf16, #tpu.memory_space<vmem>>, vector<1x64x64xbf16>
    %53 = vector.shape_cast %52 : vector<1x64x64xbf16> to vector<64x64xbf16>
    %cst_19 = arith.constant dense<0.000000e+00> : vector<16x64xf32>
    %54 = tpu.matmul %51, %53, %cst_19 {dimension_numbers = #tpu.dot_dimension_numbers<[1], [0], [0], [1], [0, 0, 1, 1], [], []>} : vector<16x64xbf16>, vector<64x64xbf16>, vector<16x64xf32> -> vector<16x64xf32>
    %c0_20 = arith.constant 0 : index
    %c0_21 = arith.constant 0 : index
    %c0_22 = arith.constant 0 : index
    %55 = vector.load %arg8[%c0_20, %c0_21, %c0_22] : memref<1x1x64xf32, #tpu.memory_space<vmem>>, vector<1x1x64xf32>
    %56 = vector.shape_cast %55 : vector<1x1x64xf32> to vector<1x64xf32>
    %57 = vector.broadcast %56 : vector<1x64xf32> to vector<16x64xf32>
    %58 = arith.addf %54, %57 : vector<16x64xf32>
    %59 = arith.addf %58, %4 : vector<16x64xf32>
    %c0_23 = arith.constant 0 : index
    %c0_24 = arith.constant 0 : index
    %c0_25 = arith.constant 0 : index
    %60 = vector.load %arg9[%c0_23, %c0_24, %c0_25] : memref<1x1x64xf32, #tpu.memory_space<vmem>>, vector<1x1x64xf32>
    %61 = vector.shape_cast %60 : vector<1x1x64xf32> to vector<1x64xf32>
    %c0_26 = arith.constant 0 : index
    %c0_27 = arith.constant 0 : index
    %c0_28 = arith.constant 0 : index
    %62 = vector.load %arg10[%c0_26, %c0_27, %c0_28] : memref<1x1x64xf32, #tpu.memory_space<vmem>>, vector<1x1x64xf32>
    %63 = vector.shape_cast %62 : vector<1x1x64xf32> to vector<1x64xf32>
    %cst_29 = arith.constant dense<0.000000e+00> : vector<16xf32>
    %64 = vector.multi_reduction <add>, %59, %cst_29 [1] : vector<16x64xf32> to vector<16xf32>
    %65 = vector.shape_cast %64 : vector<16xf32> to vector<16x1xf32>
    %cst_30 = arith.constant 6.400000e+01 : f32
    %66 = vector.broadcast %cst_30 : f32 to vector<16x1xf32>
    %67 = arith.divf %65, %66 : vector<16x1xf32>
    %68 = vector.broadcast %67 : vector<16x1xf32> to vector<16x64xf32>
    %69 = arith.subf %59, %68 : vector<16x64xf32>
    %70 = arith.mulf %69, %69 : vector<16x64xf32>
    %cst_31 = arith.constant dense<0.000000e+00> : vector<16xf32>
    %71 = vector.multi_reduction <add>, %70, %cst_31 [1] : vector<16x64xf32> to vector<16xf32>
    %72 = vector.shape_cast %71 : vector<16xf32> to vector<16x1xf32>
    %cst_32 = arith.constant 6.400000e+01 : f32
    %73 = vector.broadcast %cst_32 : f32 to vector<16x1xf32>
    %74 = arith.divf %72, %73 : vector<16x1xf32>
    %cst_33 = arith.constant 9.99999974E-6 : f32
    %75 = vector.broadcast %cst_33 : f32 to vector<16x1xf32>
    %76 = arith.addf %74, %75 : vector<16x1xf32>
    %77 = math.rsqrt %76 : vector<16x1xf32>
    %78 = vector.broadcast %77 : vector<16x1xf32> to vector<16x64xf32>
    %79 = arith.mulf %69, %78 : vector<16x64xf32>
    %80 = vector.broadcast %61 : vector<1x64xf32> to vector<16x64xf32>
    %81 = arith.mulf %79, %80 : vector<16x64xf32>
    %82 = vector.broadcast %63 : vector<1x64xf32> to vector<16x64xf32>
    %83 = arith.addf %81, %82 : vector<16x64xf32>
    %84 = arith.truncf %83 : vector<16x64xf32> to vector<16x64xbf16>
    %c0_34 = arith.constant 0 : index
    %c0_35 = arith.constant 0 : index
    %c0_36 = arith.constant 0 : index
    %85 = vector.load %arg11[%c0_34, %c0_35, %c0_36] : memref<1x64x128xbf16, #tpu.memory_space<vmem>>, vector<1x64x128xbf16>
    %86 = vector.shape_cast %85 : vector<1x64x128xbf16> to vector<64x128xbf16>
    %cst_37 = arith.constant dense<0.000000e+00> : vector<16x128xf32>
    %87 = tpu.matmul %84, %86, %cst_37 {dimension_numbers = #tpu.dot_dimension_numbers<[1], [0], [0], [1], [0, 0, 1, 1], [], []>} : vector<16x64xbf16>, vector<64x128xbf16>, vector<16x128xf32> -> vector<16x128xf32>
    %c0_38 = arith.constant 0 : index
    %c0_39 = arith.constant 0 : index
    %c0_40 = arith.constant 0 : index
    %88 = vector.load %arg12[%c0_38, %c0_39, %c0_40] : memref<1x1x128xf32, #tpu.memory_space<vmem>>, vector<1x1x128xf32>
    %89 = vector.shape_cast %88 : vector<1x1x128xf32> to vector<1x128xf32>
    %90 = vector.broadcast %89 : vector<1x128xf32> to vector<16x128xf32>
    %91 = arith.addf %87, %90 : vector<16x128xf32>
    %cst_41 = arith.constant 5.000000e-01 : f32
    %92 = vector.broadcast %cst_41 : f32 to vector<16x128xf32>
    %93 = arith.mulf %92, %91 : vector<16x128xf32>
    %cst_42 = arith.constant 4.471500e-02 : f32
    %94 = vector.broadcast %cst_42 : f32 to vector<16x128xf32>
    %95 = arith.mulf %94, %91 : vector<16x128xf32>
    %96 = arith.mulf %95, %91 : vector<16x128xf32>
    %97 = arith.mulf %96, %91 : vector<16x128xf32>
    %98 = arith.addf %91, %97 : vector<16x128xf32>
    %cst_43 = arith.constant 0.797884583 : f32
    %99 = vector.broadcast %cst_43 : f32 to vector<16x128xf32>
    %100 = arith.mulf %99, %98 : vector<16x128xf32>
    %101 = math.tanh %100 : vector<16x128xf32>
    %cst_44 = arith.constant 1.000000e+00 : f32
    %102 = vector.broadcast %cst_44 : f32 to vector<16x128xf32>
    %103 = arith.addf %102, %101 : vector<16x128xf32>
    %104 = arith.mulf %93, %103 : vector<16x128xf32>
    %105 = arith.truncf %104 : vector<16x128xf32> to vector<16x128xbf16>
    %c0_45 = arith.constant 0 : index
    %c0_46 = arith.constant 0 : index
    %c0_47 = arith.constant 0 : index
    %106 = vector.load %arg13[%c0_45, %c0_46, %c0_47] : memref<1x128x64xbf16, #tpu.memory_space<vmem>>, vector<1x128x64xbf16>
    %107 = vector.shape_cast %106 : vector<1x128x64xbf16> to vector<128x64xbf16>
    %cst_48 = arith.constant dense<0.000000e+00> : vector<16x64xf32>
    %108 = tpu.matmul %105, %107, %cst_48 {dimension_numbers = #tpu.dot_dimension_numbers<[1], [0], [0], [1], [0, 0, 1, 1], [], []>} : vector<16x128xbf16>, vector<128x64xbf16>, vector<16x64xf32> -> vector<16x64xf32>
    %c0_49 = arith.constant 0 : index
    %c0_50 = arith.constant 0 : index
    %c0_51 = arith.constant 0 : index
    %109 = vector.load %arg14[%c0_49, %c0_50, %c0_51] : memref<1x1x64xf32, #tpu.memory_space<vmem>>, vector<1x1x64xf32>
    %110 = vector.shape_cast %109 : vector<1x1x64xf32> to vector<1x64xf32>
    %111 = vector.broadcast %110 : vector<1x64xf32> to vector<16x64xf32>
    %112 = arith.addf %108, %111 : vector<16x64xf32>
    %113 = arith.addf %112, %83 : vector<16x64xf32>
    %c0_52 = arith.constant 0 : index
    %c0_53 = arith.constant 0 : index
    %c0_54 = arith.constant 0 : index
    %114 = vector.load %arg15[%c0_52, %c0_53, %c0_54] : memref<1x1x64xf32, #tpu.memory_space<vmem>>, vector<1x1x64xf32>
    %115 = vector.shape_cast %114 : vector<1x1x64xf32> to vector<1x64xf32>
    %c0_55 = arith.constant 0 : index
    %c0_56 = arith.constant 0 : index
    %c0_57 = arith.constant 0 : index
    %116 = vector.load %arg16[%c0_55, %c0_56, %c0_57] : memref<1x1x64xf32, #tpu.memory_space<vmem>>, vector<1x1x64xf32>
    %117 = vector.shape_cast %116 : vector<1x1x64xf32> to vector<1x64xf32>
    %cst_58 = arith.constant dense<0.000000e+00> : vector<16xf32>
    %118 = vector.multi_reduction <add>, %113, %cst_58 [1] : vector<16x64xf32> to vector<16xf32>
    %119 = vector.shape_cast %118 : vector<16xf32> to vector<16x1xf32>
    %cst_59 = arith.constant 6.400000e+01 : f32
    %120 = vector.broadcast %cst_59 : f32 to vector<16x1xf32>
    %121 = arith.divf %119, %120 : vector<16x1xf32>
    %122 = vector.broadcast %121 : vector<16x1xf32> to vector<16x64xf32>
    %123 = arith.subf %113, %122 : vector<16x64xf32>
    %124 = arith.mulf %123, %123 : vector<16x64xf32>
    %cst_60 = arith.constant dense<0.000000e+00> : vector<16xf32>
    %125 = vector.multi_reduction <add>, %124, %cst_60 [1] : vector<16x64xf32> to vector<16xf32>
    %126 = vector.shape_cast %125 : vector<16xf32> to vector<16x1xf32>
    %cst_61 = arith.constant 6.400000e+01 : f32
    %127 = vector.broadcast %cst_61 : f32 to vector<16x1xf32>
    %128 = arith.divf %126, %127 : vector<16x1xf32>
    %cst_62 = arith.constant 9.99999974E-6 : f32
    %129 = vector.broadcast %cst_62 : f32 to vector<16x1xf32>
    %130 = arith.addf %128, %129 : vector<16x1xf32>
    %131 = math.rsqrt %130 : vector<16x1xf32>
    %132 = vector.broadcast %131 : vector<16x1xf32> to vector<16x64xf32>
    %133 = arith.mulf %123, %132 : vector<16x64xf32>
    %134 = vector.broadcast %115 : vector<1x64xf32> to vector<16x64xf32>
    %135 = arith.mulf %133, %134 : vector<16x64xf32>
    %136 = vector.broadcast %117 : vector<1x64xf32> to vector<16x64xf32>
    %137 = arith.addf %135, %136 : vector<16x64xf32>
    %138 = arith.truncf %137 : vector<16x64xf32> to vector<16x64xbf16>
    %c0_63 = arith.constant 0 : index
    %c0_64 = arith.constant 0 : index
    %139 = vector.load %arg17[%c0_63, %c0_64] : memref<16x64xbf16, #tpu.memory_space<vmem>>, vector<16x64xbf16>
    tpu.vector_store %arg17[%c0_63, %c0_64], %138 {strides = array<i32>} : memref<16x64xbf16, #tpu.memory_space<vmem>>, vector<16x64xbf16>,
    return
  }
  func.func @transform_0(%arg0: i32) -> (i32, i32) {
    %c0_i32 = arith.constant 0 : i32
    %c0_i32_0 = arith.constant 0 : i32
    %c0_i32_1 = arith.constant 0 : i32
    return %c0_i32, %c0_i32_0 : i32, i32
  }
  func.func @transform_1(%arg0: i32) -> (i32, i32, i32) {
    %c0_i32 = arith.constant 0 : i32
    %c0_i32_0 = arith.constant 0 : i32
    %c0_i32_1 = arith.constant 0 : i32
    %c0_i32_2 = arith.constant 0 : i32
    return %c0_i32, %c0_i32_0, %c0_i32_1 : i32, i32, i32
  }
  func.func @transform_2(%arg0: i32) -> (i32, i32) {
    %c0_i32 = arith.constant 0 : i32
    %c0_i32_0 = arith.constant 0 : i32
    %c0_i32_1 = arith.constant 0 : i32
    return %c0_i32, %c0_i32_0 : i32, i32
  }
  func.func @transform_3(%arg0: i32) -> (i32, i32) {
    %c0_i32 = arith.constant 0 : i32
    %c0_i32_0 = arith.constant 0 : i32
    %c0_i32_1 = arith.constant 0 : i32
    return %c0_i32, %c0_i32_0 : i32, i32
  }
  func.func @transform_4(%arg0: i32) -> (i32, i32, i32) {
    %c0_i32 = arith.constant 0 : i32
    %c0_i32_0 = arith.constant 0 : i32
    %c0_i32_1 = arith.constant 0 : i32
    return %arg0, %c0_i32, %c0_i32_0 : i32, i32, i32
  }
  func.func @transform_5(%arg0: i32) -> (i32, i32, i32) {
    %c0_i32 = arith.constant 0 : i32
    %c0_i32_0 = arith.constant 0 : i32
    %c0_i32_1 = arith.constant 0 : i32
    return %arg0, %c0_i32, %c0_i32_0 : i32, i32, i32
  }
  func.func @transform_6(%arg0: i32) -> (i32, i32, i32) {
    %c0_i32 = arith.constant 0 : i32
    %c0_i32_0 = arith.constant 0 : i32
    %c0_i32_1 = arith.constant 0 : i32
    return %arg0, %c0_i32, %c0_i32_0 : i32, i32, i32
  }
  func.func @transform_7(%arg0: i32) -> (i32, i32, i32) {
    %c0_i32 = arith.constant 0 : i32
    %c0_i32_0 = arith.constant 0 : i32
    %c0_i32_1 = arith.constant 0 : i32
    return %arg0, %c0_i32, %c0_i32_0 : i32, i32, i32
  }
  func.func @transform_8(%arg0: i32) -> (i32, i32, i32) {
    %c0_i32 = arith.constant 0 : i32
    %c0_i32_0 = arith.constant 0 : i32
    %c0_i32_1 = arith.constant 0 : i32
    return %arg0, %c0_i32, %c0_i32_0 : i32, i32, i32
  }
  func.func @transform_9(%arg0: i32) -> (i32, i32, i32) {
    %c0_i32 = arith.constant 0 : i32
    %c0_i32_0 = arith.constant 0 : i32
    %c0_i32_1 = arith.constant 0 : i32
    return %arg0, %c0_i32, %c0_i32_0 : i32, i32, i32
  }
  func.func @transform_10(%arg0: i32) -> (i32, i32, i32) {
    %c0_i32 = arith.constant 0 : i32
    %c0_i32_0 = arith.constant 0 : i32
    %c0_i32_1 = arith.constant 0 : i32
    return %arg0, %c0_i32, %c0_i32_0 : i32, i32, i32
  }
  func.func @transform_11(%arg0: i32) -> (i32, i32, i32) {
    %c0_i32 = arith.constant 0 : i32
    %c0_i32_0 = arith.constant 0 : i32
    %c0_i32_1 = arith.constant 0 : i32
    return %arg0, %c0_i32, %c0_i32_0 : i32, i32, i32
  }
  func.func @transform_12(%arg0: i32) -> (i32, i32, i32) {
    %c0_i32 = arith.constant 0 : i32
    %c0_i32_0 = arith.constant 0 : i32
    %c0_i32_1 = arith.constant 0 : i32
    return %arg0, %c0_i32, %c0_i32_0 : i32, i32, i32
  }
  func.func @transform_13(%arg0: i32) -> (i32, i32, i32) {
    %c0_i32 = arith.constant 0 : i32
    %c0_i32_0 = arith.constant 0 : i32
    %c0_i32_1 = arith.constant 0 : i32
    return %arg0, %c0_i32, %c0_i32_0 : i32, i32, i32
  }
  func.func @transform_14(%arg0: i32) -> (i32, i32, i32) {
    %c0_i32 = arith.constant 0 : i32
    %c0_i32_0 = arith.constant 0 : i32
    %c0_i32_1 = arith.constant 0 : i32
    return %arg0, %c0_i32, %c0_i32_0 : i32, i32, i32
  }
  func.func @transform_15(%arg0: i32) -> (i32, i32, i32) {
    %c0_i32 = arith.constant 0 : i32
    %c0_i32_0 = arith.constant 0 : i32
    %c0_i32_1 = arith.constant 0 : i32
    return %arg0, %c0_i32, %c0_i32_0 : i32, i32, i32
  }
  func.func @transform_16(%arg0: i32) -> (i32, i32) {
    %c0_i32 = arith.constant 0 : i32
    %c0_i32_0 = arith.constant 0 : i32
    %c0_i32_1 = arith.constant 0 : i32
    return %c0_i32, %c0_i32_0 : i32, i32
  }
}

module attributes {stable_mosaic.version = 11 : i64} {
  func.func @_pooler_head_kernel(%arg0: memref<16x64xbf16, #tpu.memory_space<vmem>>, %arg1: memref<64x64xbf16, #tpu.memory_space<vmem>>, %arg2: memref<1x64xf32, #tpu.memory_space<vmem>>, %arg3: memref<64x128xbf16, #tpu.memory_space<vmem>>, %arg4: memref<1x128xf32, #tpu.memory_space<vmem>>, %arg5: memref<128x128xbf16, #tpu.memory_space<vmem>>, %arg6: memref<1x128xf32, #tpu.memory_space<vmem>>, %arg7: memref<128x128xbf16, #tpu.memory_space<vmem>>, %arg8: memref<1x128xf32, #tpu.memory_space<vmem>>, %arg9: memref<2x128xf32, #tpu.memory_space<vmem>>) attributes {dimension_semantics = [], scalar_prefetch = 0 : i64, scratch_operands = 0 : i64, tpu.core_type = #tpu.core_type<tc>} {
    %c0 = arith.constant 0 : index
    %c0_0 = arith.constant 0 : index
    %0 = vector.load %arg0[%c0, %c0_0] : memref<16x64xbf16, #tpu.memory_space<vmem>>, vector<16x64xbf16>
    %1 = vector.shape_cast %0 : vector<16x64xbf16> to vector<2x8x64xbf16>
    %2 = vector.extract_strided_slice %1 {offsets = [0, 0, 0], sizes = [2, 1, 64], strides = [1, 1, 1]} : vector<2x8x64xbf16> to vector<2x1x64xbf16>
    %3 = vector.shape_cast %2 : vector<2x1x64xbf16> to vector<2x64xbf16>
    %c0_1 = arith.constant 0 : index
    %c0_2 = arith.constant 0 : index
    %4 = vector.load %arg1[%c0_1, %c0_2] : memref<64x64xbf16, #tpu.memory_space<vmem>>, vector<64x64xbf16>
    %cst = arith.constant dense<0.000000e+00> : vector<2x64xf32>
    %5 = tpu.matmul %3, %4, %cst {dimension_numbers = #tpu.dot_dimension_numbers<[1], [0], [0], [1], [0, 0, 1, 1], [], []>} : vector<2x64xbf16>, vector<64x64xbf16>, vector<2x64xf32> -> vector<2x64xf32>
    %c0_3 = arith.constant 0 : index
    %c0_4 = arith.constant 0 : index
    %6 = vector.load %arg2[%c0_3, %c0_4] : memref<1x64xf32, #tpu.memory_space<vmem>>, vector<1x64xf32>
    %7 = vector.broadcast %6 : vector<1x64xf32> to vector<2x64xf32>
    %8 = arith.addf %5, %7 : vector<2x64xf32>
    %9 = math.tanh %8 : vector<2x64xf32>
    %10 = arith.truncf %9 : vector<2x64xf32> to vector<2x64xbf16>
    %c0_5 = arith.constant 0 : index
    %c0_6 = arith.constant 0 : index
    %11 = vector.load %arg3[%c0_5, %c0_6] : memref<64x128xbf16, #tpu.memory_space<vmem>>, vector<64x128xbf16>
    %cst_7 = arith.constant dense<0.000000e+00> : vector<2x128xf32>
    %12 = tpu.matmul %10, %11, %cst_7 {dimension_numbers = #tpu.dot_dimension_numbers<[1], [0], [0], [1], [0, 0, 1, 1], [], []>} : vector<2x64xbf16>, vector<64x128xbf16>, vector<2x128xf32> -> vector<2x128xf32>
    %c0_8 = arith.constant 0 : index
    %c0_9 = arith.constant 0 : index
    %13 = vector.load %arg4[%c0_8, %c0_9] : memref<1x128xf32, #tpu.memory_space<vmem>>, vector<1x128xf32>
    %14 = vector.broadcast %13 : vector<1x128xf32> to vector<2x128xf32>
    %15 = arith.addf %12, %14 : vector<2x128xf32>
    %cst_10 = arith.constant 0.000000e+00 : f32
    %16 = vector.broadcast %cst_10 : f32 to vector<2x128xf32>
    %17 = arith.maximumf %15, %16 : vector<2x128xf32>
    %18 = arith.truncf %17 : vector<2x128xf32> to vector<2x128xbf16>
    %c0_11 = arith.constant 0 : index
    %c0_12 = arith.constant 0 : index
    %19 = vector.load %arg5[%c0_11, %c0_12] : memref<128x128xbf16, #tpu.memory_space<vmem>>, vector<128x128xbf16>
    %cst_13 = arith.constant dense<0.000000e+00> : vector<2x128xf32>
    %20 = tpu.matmul %18, %19, %cst_13 {dimension_numbers = #tpu.dot_dimension_numbers<[1], [0], [0], [1], [0, 0, 1, 1], [], []>} : vector<2x128xbf16>, vector<128x128xbf16>, vector<2x128xf32> -> vector<2x128xf32>
    %c0_14 = arith.constant 0 : index
    %c0_15 = arith.constant 0 : index
    %21 = vector.load %arg6[%c0_14, %c0_15] : memref<1x128xf32, #tpu.memory_space<vmem>>, vector<1x128xf32>
    %22 = vector.broadcast %21 : vector<1x128xf32> to vector<2x128xf32>
    %23 = arith.addf %20, %22 : vector<2x128xf32>
    %cst_16 = arith.constant 0.000000e+00 : f32
    %24 = vector.broadcast %cst_16 : f32 to vector<2x128xf32>
    %25 = arith.maximumf %23, %24 : vector<2x128xf32>
    %26 = arith.truncf %25 : vector<2x128xf32> to vector<2x128xbf16>
    %c0_17 = arith.constant 0 : index
    %c0_18 = arith.constant 0 : index
    %27 = vector.load %arg7[%c0_17, %c0_18] : memref<128x128xbf16, #tpu.memory_space<vmem>>, vector<128x128xbf16>
    %cst_19 = arith.constant dense<0.000000e+00> : vector<2x128xf32>
    %28 = tpu.matmul %26, %27, %cst_19 {dimension_numbers = #tpu.dot_dimension_numbers<[1], [0], [0], [1], [0, 0, 1, 1], [], []>} : vector<2x128xbf16>, vector<128x128xbf16>, vector<2x128xf32> -> vector<2x128xf32>
    %c0_20 = arith.constant 0 : index
    %c0_21 = arith.constant 0 : index
    %29 = vector.load %arg8[%c0_20, %c0_21] : memref<1x128xf32, #tpu.memory_space<vmem>>, vector<1x128xf32>
    %30 = vector.broadcast %29 : vector<1x128xf32> to vector<2x128xf32>
    %31 = arith.addf %28, %30 : vector<2x128xf32>
    %c0_22 = arith.constant 0 : index
    %c0_23 = arith.constant 0 : index
    %32 = vector.load %arg9[%c0_22, %c0_23] : memref<2x128xf32, #tpu.memory_space<vmem>>, vector<2x128xf32>
    tpu.vector_store %arg9[%c0_22, %c0_23], %31 {strides = array<i32>} : memref<2x128xf32, #tpu.memory_space<vmem>>, vector<2x128xf32>,
    return
  }
}

</mosaic_0001>

<bundles_post_ra>
// kernel: _lambda_.3
= control target key start
LH: loop header
LB: loop body
LE: loop exit
PB: predicated region body
PF: predicated region fallthrough
CT: control target
= control target key end

     0   :  { %v635_v1 = vmov 0.0   ;;  %vm636_vm0 = vmmov 0   ;;  %vm60_vm1 = vcmask 1041409   ;;  %vm87_vm2 = vcmask 523264   ;;  %s824_s0 = inlined_call_operand.vmem [shape: bf16[16,64], index: 0, kind: input, shape index: {}]   ;;  %s825_s1 = inlined_call_operand.vmem [shape: bf16[64,64], index: 1, kind: input, shape index: {}]   ;;  %s826_s2 = inlined_call_operand.vmem [shape: f32[1,64], index: 2, kind: input, shape index: {}]   ;;  %s827_s3 = inlined_call_operand.vmem [shape: bf16[64,128], index: 3, kind: input, shape index: {}]   ;;  %s828_s4 = inlined_call_operand.vmem [shape: f32[1,128], index: 4, kind: input, shape index: {}]   ;;  %s829_s5 = inlined_call_operand.vmem [shape: bf16[128,128], index: 5, kind: input, shape index: {}]   ;;  %s830_s6 = inlined_call_operand.vmem [shape: f32[1,128], index: 6, kind: input, shape index: {}]   ;;  %s831_s7 = inlined_call_operand.vmem [shape: bf16[128,128], index: 7, kind: input, shape index: {}]   ;;  %s832_s8 = inlined_call_operand.vmem [shape: f32[1,128], index: 8, kind: input, shape index: {}]   ;;  %s833_s9 = inlined_call_operand.hbm [shape: f32[2,128], index: 9, kind: output, shape index: {}]  }
   0x1   :  { %v583_v0 = vld [vmem:[%s825_s1] sm:$0xff]   ;;  %516 = vmatprep.subr.bf16.mxu0 %v635_v1  ;;  %528 = vmatprep.subr.bf16.mxu1 %v635_v1  ;;  %v584_v2 = vld [vmem:[%s825_s1 + $0x8] sm:$0xff]   ;;  %v585_v4 = vld [vmem:[%s825_s1 + $0x10] sm:$0xff]  }
   0x2   :  { %517 = vmatpush3.bf16.msra.mxu0 %v583_v0  ;;  %524 = vmatprep.mubr.msk.bf16.mxu0 %vm636_vm0, %v635_v1  ;;  %v587_v3 = vld [vmem:[%s824_s0] ss:$0 sps:$4 sm:$0xff]   ;;  %v588_v5 = vld [vmem:[%s824_s0 + $0x4] ss:$0 sps:$4 sm:$0xff]   ;;  %v586_v8 = vld [vmem:[%s825_s1 + $0x18] sm:$0xff]  }
   0x3   :  { %518 = vmatprep.subr.bf16.mxu0 %v635_v1  ;;  %536 = vmatprep.mubr.msk.bf16.mxu1 %vm636_vm0, %v635_v1  ;;  %v57_v6 = vunpack.c.l.b16 %v587_v3  ;;  %v58_v7 = vunpack.c.l.b16 %v588_v5 }
   0x5   :  { %v59_v9 = vrot.slane %v58_v7, 7 }
   0x6   :  { %519 = vmatpush3.bf16.msra.mxu0 %v584_v2 }
   0x7   :  { %520 = vmatprep.subr.bf16.mxu0 %v635_v1  ;;  %v61_v10 = vsel %vm60_vm1, %v59_v9, %v57_v6 }
   0x8   :  { %v62_v11 = vpack.c.b16 %v61_v10, %v61_v10 }
   0xa   :  { %521 = vmatpush3.bf16.msra.mxu0 %v585_v4 }
   0xb   :  { %522 = vmatprep.subr.bf16.mxu0 %v635_v1 }
   0xe   :  { %523 = vmatpush3.bf16.msra.mxu0 %v586_v8 }
   0xf   :  { %540 = vmatprep.subr.bf16.mxu0 %v635_v1 }
  0x11   :  { %525 = vmatmul.mubr.msk.bf16.vlgmr.msra.gmra.mrb[0].mxu0 %vm87_vm2, %v62_v11 }
  0x12   :  { %556 = vmatprep.mubr.msk.bf16.mxu0 %vm636_vm0, %v635_v1 }
  0x13   :  { %14 = vsyncpa [#allocation3], 0  ;;  %v589_v12 = vld [vmem:[%s827_s3] sm:$0xff]   ;;  %v590_v13 = vld [vmem:[%s827_s3 + $0x8] sm:$0xff]   ;;  %s637_s18 = smov [#allocation2]  }
  0x14   :  { %529 = vmatpush3.bf16.msra.mxu1 %v589_v12  ;;  %v591_v14 = vld [vmem:[%s827_s3 + $0x10] sm:$0xff]   ;;  %v592_v15 = vld [vmem:[%s827_s3 + $0x18] sm:$0xff]   ;;  %v593_v16 = vld [vmem:[%s829_s5] sm:$0xff]   ;;  %s448_s19 = sshll.u32 %s637_s18, 4  ;;  %s449_s19 = int_to_ptr.vmem [resolvable:$true] %s448_s19 }
  0x15   :  { %530 = vmatprep.subr.bf16.mxu1 %v635_v1  ;;  %541 = vmatpush3.bf16.msra.mxu0 %v593_v16  ;;  %v594_v17 = vld [vmem:[%s829_s5 + $0x8] sm:$0xff]   ;;  %v595_v18 = vld [vmem:[%s829_s5 + $0x10] sm:$0xff]   ;;  %v596_v19 = vld [vmem:[%s829_s5 + $0x18] sm:$0xff]   ;;  %p616_p1 = scmp.lt.s32.totalorder %s449_s19, %s449_s19 }
  0x16   :  { %542 = vmatprep.subr.bf16.mxu0 %v635_v1  ;;  %v597_v20 = vld [vmem:[%s829_s5 + $0x20] sm:$0xff]   ;;  %v598_v21 = vld [vmem:[%s829_s5 + $0x28] sm:$0xff]   ;;  %v599_v30 = vld [vmem:[%s829_s5 + $0x30] sm:$0xff]  }
  0x17   :  { %v456_v22 = vld [vmem:[%s826_s2] ss:$0 sm:$0xff]  ;;  %v600_v31 = vld [vmem:[%s829_s5 + $0x38] sm:$0xff]   ;;  %v602_v33 = vld [vmem:[%s831_s7 + $0x8] sm:$0xff]  }
  0x18   :  { %531 = vmatpush3.bf16.msra.mxu1 %v590_v13  ;;  %v601_v32 = vld [vmem:[%s831_s7] sm:$0xff]   ;;  %v603_v34 = vld [vmem:[%s831_s7 + $0x10] sm:$0xff]   ;;  %v604_v35 = vld [vmem:[%s831_s7 + $0x18] sm:$0xff]  }
  0x19   :  { %532 = vmatprep.subr.bf16.mxu1 %v635_v1  ;;  %543 = vmatpush3.bf16.msra.mxu0 %v594_v17  ;;  %v605_v36 = vld [vmem:[%s831_s7 + $0x20] sm:$0xff]   ;;  %v606_v37 = vld [vmem:[%s831_s7 + $0x28] sm:$0xff]   ;;  %v607_v46 = vld [vmem:[%s831_s7 + $0x30] sm:$0xff]  }
  0x1a   :  { %544 = vmatprep.subr.bf16.mxu0 %v635_v1  ;;  %v464_v38 = vld [vmem:[%s828_s4] ss:$0 sm:$0xff]  ;;  %v608_v47 = vld [vmem:[%s831_s7 + $0x38] sm:$0xff]  }
  0x1b   :  { %v470_v48 = vld [vmem:[%s830_s6] ss:$0 sm:$0xff]  ;;  %s611_s6 = scalar_lea.vmem %s449_s19, 32 }
  0x1c   :  { %533 = vmatpush3.bf16.msra.mxu1 %v591_v14  ;;  %v479_v56 = vld [vmem:[%s832_s8] ss:$0 sm:$0xff]  ;;  %p612_p0 = scmp.ne.s32.totalorder %s449_s19, %s611_s6  ;;  %p617_p2 = scmp.lt.s32.totalorder %s611_s6, %s611_s6 }
  0x1d   :  { %534 = vmatprep.subr.bf16.mxu1 %v635_v1  ;;  %545 = vmatpush3.bf16.msra.mxu0 %v595_v18 }
  0x1e   :  { %546 = vmatprep.subr.bf16.mxu0 %v635_v1  ;;  %p618_p3 = por %p617_p2, %p616_p1 }
  0x20   :  { %535 = vmatpush3.bf16.msra.mxu1 %v592_v15  ;;  %p619_p4 = pnand %p618_p3, %p612_p0 }
  0x21   :  { %560 = vmatprep.subr.bf16.mxu1 %v635_v1  ;;  %547 = vmatpush3.bf16.msra.mxu0 %v596_v19 }
  0x22   :  { %548 = vmatprep.subr.bf16.mxu0 %v635_v1 }
  0x25   :  { %549 = vmatpush3.bf16.msra.mxu0 %v597_v20 }
  0x26   :  { %550 = vmatprep.subr.bf16.mxu0 %v635_v1 }
  0x29   :  { %551 = vmatpush3.bf16.msra.mxu0 %v598_v21 }
  0x2a   :  { %552 = vmatprep.subr.bf16.mxu0 %v635_v1 }
  0x2d   :  { %553 = vmatpush3.bf16.msra.mxu0 %v599_v30 }
  0x2e   :  { %554 = vmatprep.subr.bf16.mxu0 %v635_v1 }
  0x31   :  { %555 = vmatpush3.bf16.msra.mxu0 %v600_v31 }
  0xe4   :  { %v125_v23 = vpop.f32.mrb[0].mxu0 }
  0xe5   :  { %v126_v24 = vadd.f32 %v456_v22, %v125_v23  ;;  %v526_v25 = vpop.f32.mrb[1].mxu0 }
  0xe6   :  { %v128_v26 = vpop.f32.mrb[2].mxu0 }
  0xe7   :  { %609 = vtanh.f32 %v126_v24  ;;  %v527_v27 = vpop.f32.mrb[3].mxu0 }
  0xf1   :  { %v610_v28 = vpop.eup %609 }
  0xf2   :  { %v132_v29 = vpack.c.bf16 %v610_v28, %v610_v28 }
  0xf4   :  { %537 = vmatmul.mubr.msk.bf16.vlgmr.msra.gmra.mrb[0].mxu1 %vm87_vm2, %v132_v29 }
  0xf5   :  { %576 = vmatprep.mubr.msk.bf16.mxu1 %vm636_vm0, %v635_v1  ;;  %561 = vmatpush3.bf16.msra.mxu1 %v601_v32 }
  0xf6   :  { %562 = vmatprep.subr.bf16.mxu1 %v635_v1 }
  0xf9   :  { %563 = vmatpush3.bf16.msra.mxu1 %v602_v33 }
  0xfa   :  { %564 = vmatprep.subr.bf16.mxu1 %v635_v1 }
  0xfd   :  { %565 = vmatpush3.bf16.msra.mxu1 %v603_v34 }
  0xfe   :  { %566 = vmatprep.subr.bf16.mxu1 %v635_v1 }
 0x101   :  { %567 = vmatpush3.bf16.msra.mxu1 %v604_v35 }
 0x102   :  { %568 = vmatprep.subr.bf16.mxu1 %v635_v1 }
 0x105   :  { %569 = vmatpush3.bf16.msra.mxu1 %v605_v36 }
 0x106   :  { %570 = vmatprep.subr.bf16.mxu1 %v635_v1 }
 0x109   :  { %571 = vmatpush3.bf16.msra.mxu1 %v606_v37 }
 0x10a   :  { %572 = vmatprep.subr.bf16.mxu1 %v635_v1 }
 0x10d   :  { %573 = vmatpush3.bf16.msra.mxu1 %v607_v46 }
 0x10e   :  { %574 = vmatprep.subr.bf16.mxu1 %v635_v1 }
 0x111   :  { %575 = vmatpush3.bf16.msra.mxu1 %v608_v47 }
 0x1c7   :  { %v209_v39 = vpop.f32.mrb[0].mxu1 }
 0x1c8   :  { %v210_v40 = vadd.f32 %v464_v38, %v209_v39  ;;  %v538_v41 = vpop.f32.mrb[1].mxu1 }
 0x1c9   :  { %v212_v42 = vpop.f32.mrb[2].mxu1 }
 0x1ca   :  { %v215_v43 = vmax.f32 %v210_v40, 0.0  ;;  %v539_v44 = vpop.f32.mrb[3].mxu1 }
 0x1cc   :  { %v216_v45 = vpack.c.bf16 %v215_v43, %v215_v43 }
 0x1ce   :  { %557 = vmatmul.mubr.bf16.vlgmr.msra.gmra.mrb[4].mxu0 %v216_v45 }
 0x2a1   :  { %v322_v49 = vpop.f32.mrb[4].mxu0 }
 0x2a2   :  { %v323_v50 = vadd.f32 %v470_v48, %v322_v49  ;;  %v558_v51 = vpop.f32.mrb[5].mxu0 }
 0x2a3   :  { %v325_v52 = vpop.f32.mrb[6].mxu0 }
 0x2a4   :  { %v328_v53 = vmax.f32 %v323_v50, 0.0  ;;  %v559_v54 = vpop.f32.mrb[7].mxu0 }
 0x2a6   :  { %v329_v55 = vpack.c.bf16 %v328_v53, %v328_v53 }
 0x2a8   :  { %577 = vmatmul.mubr.bf16.vlgmr.msra.gmra.mrb[4].mxu1 %v329_v55 }
 0x37b   :  { %v435_v57 = vpop.f32.mrb[4].mxu1 }
 0x37c   :  { %v436_v58 = vadd.f32 %v479_v56, %v435_v57  ;;  %v578_v59 = vpop.f32.mrb[5].mxu1 }
 0x37d   :  { %v438_v60 = vpop.f32.mrb[6].mxu1 }
 0x37e   :  { %441 = vst [vmem:[#allocation2] sm:$0x3] %v436_v58  ;;  %v579_v61 = vpop.f32.mrb[7].mxu1 }
 0x37f   :  { %622 = shalt.err (!%p619_p4)
}
 0x380   :  { %s623_s8 = scalar_lea.hbm %s833_s9, 32 }
 0x381   :  { %p624_p5 = scmp.ne.s32.totalorder %s833_s9, %s623_s8  ;;  %p627_p6 = scmp.lt.u32.totalorder %s623_s8, %s833_s9 }
 0x383   :  { %p629_p7 = pnand %p627_p6, %p624_p5 }
 0x385   :  { %632 = shalt.err (!%p629_p7)
}
 0x386   :  { %451 = dma.vmem_to_hbm [thread:$0]  %s449_s19, 32, %s833_s9, [#allocation3]  }
 0x387   :  { %633 = dma.done.wait [#allocation3], 32  }
 0x388   :  { %634 = vsyncadd [#allocation3], 4294967264 }
 0x389   :  { %455 = vsyncpa [#allocation3], 1 }

// kernel: _lambda_.2
= control target key start
LH: loop header
LB: loop body
LE: loop exit
PB: predicated region body
PF: predicated region fallthrough
CT: control target
= control target key end

     0   :  { %s3930_s21 = smov 0   ;;  %s4448_s0 = inlined_call_operand.vmem [shape: f32[16,64], index: 0, kind: input, shape index: {}]   ;;  %s4449_s1 = inlined_call_operand.vmem [shape: f32[2,1,8], index: 1, kind: input, shape index: {}]   ;;  %s4450_s2 = inlined_call_operand.vmem [shape: f32[1,64], index: 2, kind: input, shape index: {}]   ;;  %s4451_s3 = inlined_call_operand.vmem [shape: f32[1,64], index: 3, kind: input, shape index: {}]   ;;  %s4452_s4 = inlined_call_operand.vmem [shape: bf16[2,64,192], index: 4, kind: input, shape index: {}]   ;;  %s4453_s5 = inlined_call_operand.vmem [shape: f32[2,1,192], index: 5, kind: input, shape index: {}]   ;;  %s4454_s6 = inlined_call_operand.vmem [shape: bf16[2,64,64], index: 6, kind: input, shape index: {}]   ;;  %s4455_s7 = inlined_call_operand.vmem [shape: f32[2,1,64], index: 7, kind: input, shape index: {}]   ;;  %s4456_s8 = inlined_call_operand.vmem [shape: f32[2,1,64], index: 8, kind: input, shape index: {}]   ;;  %s4457_s9 = inlined_call_operand.vmem [shape: f32[2,1,64], index: 9, kind: input, shape index: {}]   ;;  %s4458_s10 = inlined_call_operand.vmem [shape: bf16[2,64,128], index: 10, kind: input, shape index: {}]   ;;  %s4459_s11 = inlined_call_operand.vmem [shape: f32[2,1,128], index: 11, kind: input, shape index: {}]   ;;  %s4460_s12 = inlined_call_operand.vmem [shape: bf16[2,128,64], index: 12, kind: input, shape index: {}]   ;;  %s4461_s13 = inlined_call_operand.vmem [shape: f32[2,1,64], index: 13, kind: input, shape index: {}]   ;;  %s4462_s14 = inlined_call_operand.vmem [shape: f32[2,1,64], index: 14, kind: input, shape index: {}]   ;;  %s4463_s15 = inlined_call_operand.vmem [shape: f32[2,1,64], index: 15, kind: input, shape index: {}]   ;;  %s4464_s16 = inlined_call_operand.vmem [shape: bf16[16,64], index: 16, kind: output, shape index: {}]  }
   0x1   :  { %4470 = sst [smem:[#allocation3_spill]] %s4448_s0 }
   0x2   :  { %4471 = sst [smem:[#allocation4_spill]] %s4449_s1 }
   0x3   :  { %4472 = sst [smem:[#allocation5_spill]] %s4450_s2 }
   0x4   :  { %4473 = sst [smem:[#allocation6_spill]] %s4451_s3 }
   0x5   :  { %4474 = sst [smem:[#allocation7_spill]] %s4452_s4 }
   0x6   :  { %4475 = sst [smem:[#allocation8_spill]] %s4453_s5 }
   0x7   :  { %4476 = sst [smem:[#allocation9_spill]] %s4454_s6 }
   0x8   :  { %4477 = sst [smem:[#allocation10_spill]] %s4464_s16 }
   0x9 LB: > { %4478 = sst [smem:[#allocation2_spill]] %s3831_s21  ;;  %s3421_s22 = sadd.s32 4294967295, %s3831_s21   ;;  %s3831_s21 = sphi %s3930_s21, %s26_s21  }
   0xa   : > { %p3424_p0 = scmp.ge.s32.totalorder %s3831_s21, 1  ;;  %p552_p1 = scmp.lt.s32.totalorder %s3831_s21, 3 }
   0xc   : > { %p553_p2 = pnand %p3424_p0, %p552_p1 }
   0xd   : > { %p637_p3 = scmp.lt.s32.totalorder (!%p553_p2), %s3421_s22, 1  ;;  %s4479_s4 = sld [smem:[#allocation7_spill]] (!%p553_p2) }
   0xe   : > { %556 = sbr.rel (%p553_p2) target bundleno = 2972 (0xb9c), region = 84  ;;  %s4480_s5 = sld [smem:[#allocation8_spill]] (!%p553_p2) }
   0xf   : > { %s4481_s6 = sld [smem:[#allocation9_spill]] (!%p553_p2)  ;;  %p3434_p4 = scmp.ne.s32.totalorder (!%p553_p2), %s3421_s22, 0 }
  0x15   : > { %s3938_s23 = scalar_select %p637_p3, %s3421_s22, 1 }
  0x16   : > { %686 = sbr.rel (%p3434_p4) target bundleno = 349 (0x15d), region = 88  ;;  %s4482_s20 = sld [smem:[#allocation3_spill]] (!%p3434_p4)  ;;  %vm691_vm0 = vcmask (!%p3434_p4), 523264   ;;  %vm743_vm1 = vcmask (!%p3434_p4), 519168  }
  0x17   : > { %s3512_s24 = sshll.u32 %s3938_s23, 6  ;;  %s3427_s25 = sshll.u32 %s3938_s23, 1 }
  0x18   : > { %s3945_s28 = scalar_lea.vmem %s4479_s4, %s3512_s24  ;;  %s3950_s0 = scalar_lea.vmem %s4480_s5, %s3427_s25 }
  0x19   : > { %s3513_s17 = sshll.u32 %s3938_s23, 5  ;;  %s675_s26 = scalar_lea.vmem %s4461_s13, %s3938_s23 }
  0x1a   : > { %s3960_s16 = scalar_lea.vmem %s4481_s6, %s3513_s17  ;;  %s3973_s5 = scalar_lea.vmem %s4458_s10, %s3513_s17 }
  0x1b   : > { %s3982_s6 = scalar_lea.vmem %s4460_s12, %s3512_s24  ;;  %s678_s29 = scalar_lea.vmem %s4462_s14, %s3938_s23 }
  0x1c   : > { %s681_s30 = scalar_lea.vmem %s4463_s15, %s3938_s23  ;;  %v687_v0 = vld [vmem:[%s4482_s20] sm:$0xff] (!%p3434_p4)  ;;  %v688_v1 = vld [vmem:[%s4482_s20 + $0x8] sm:$0xff] (!%p3434_p4)  ;;  %s4483_s2 = sld [smem:[#allocation5_spill]] (!%p3434_p4) }
  0x1d   : > { %v692_v2 = vsel %vm691_vm0, %v687_v0, 0.0  ;;  %v695_v3 = vsel %vm691_vm0, %v688_v1, 0.0  ;;  %s4484_s27 = sld [smem:[#allocation6_spill]]  ;;  %s4485_s18 = sld [smem:[#allocation10_spill]] }
  0x1e   : > { %693 = vadd.xlane.f32.xlu0 %v692_v2 }
  0x22   : > { %696 = vadd.xlane.f32.xlu0 %v695_v3  ;;  %v3435_v21 = vld [vmem:[%s4483_s2] ss:$0 sm:$0xff] }
  0x23   : > { %v3436_v23 = vld [vmem:[%s4484_s27] ss:$0 sm:$0xff] }
  0xab   : > { %v694_v4 = vpop.xlane.xlu0 %693 }
  0xac   : > { %v699_v5 = vmul.f32 0.015625, %v694_v4 }
  0xae   : > { %v701_v6 = vsub.f32 %v687_v0, %v699_v5 }
  0xaf   : > { %v697_v7 = vpop.xlane.xlu0 %696 }
  0xb0   : > { %v700_v8 = vmul.f32 0.015625, %v697_v7  ;;  %v703_v9 = vmul.f32 %v701_v6, %v701_v6 }
  0xb2   : > { %v702_v10 = vsub.f32 %v688_v1, %v700_v8  ;;  %v705_v11 = vsel %vm691_vm0, %v703_v9, 0.0 }
  0xb3   : > { %706 = vadd.xlane.f32.xlu1 %v705_v11 }
  0xb4   : > { %v704_v12 = vmul.f32 %v702_v10, %v702_v10 }
  0xb6   : > { %v708_v13 = vsel %vm691_vm0, %v704_v12, 0.0 }
  0xb7   : > { %709 = vadd.xlane.f32.xlu1 %v708_v13 }
 0x140   : > { %v707_v14 = vpop.xlane.xlu1 %706 }
 0x141   : > { %v711_v15 = vmul.f32 0.015625, %v707_v14 }
 0x143   : > { %v713_v16 = vadd.f32 1e-05, %v711_v15 }
 0x144   : > { %v710_v17 = vpop.xlane.xlu1 %709 }
 0x145   : > { %3731 = vrsqrt.f32 %v713_v16  ;;  %v712_v18 = vmul.f32 0.015625, %v710_v17 }
 0x147   : > { %v714_v19 = vadd.f32 1e-05, %v712_v18 }
 0x149   : > { %3733 = vrsqrt.f32 %v714_v19 }
 0x14f   : > { %v3732_v20 = vpop.eup %3731 }
 0x150   : > { %v717_v22 = vmul.f32 %v3732_v20, %v701_v6 }
 0x152   : > { %v725_v24 = vmul.f32 %v3435_v21, %v717_v22 }
 0x153   : > { %v3734_v25 = vpop.eup %3733 }
 0x154   : > { %v733_v26 = vadd.f32 %v3436_v23, %v725_v24  ;;  %v718_v27 = vmul.f32 %v3734_v25, %v702_v10 }
 0x156   : > { %v3516_v28 = vpack.c.bf16 %v733_v26, %v733_v26  ;;  %v726_v29 = vmul.f32 %v3435_v21, %v718_v27 }
 0x158   : > { %744 = vst.msk [vmem:[%s4485_s18] sm:$0xf] %vm743_vm1, %v3516_v28  ;;  %v734_v30 = vadd.f32 %v3436_v23, %v726_v29 }
 0x15a   : > { %v3517_v31 = vpack.c.bf16 %v734_v30, %v734_v30 }
 0x15c   : > { %745 = vst.msk [vmem:[%s4485_s18 + $0x4] sm:$0xf] %vm743_vm1, %v3517_v31 }
 0x15d PF: > { %v3750_v32 = vld [vmem:[%s3945_s28 + $0x4] ss:$8 sps:$4 sm:$0xff]   ;;  %v3752_v33 = vld [vmem:[%s3945_s28] ss:$8 sps:$4 sm:$0xff]   ;;  %v3833_v34 = vmov 0   ;;  %vm815_vm2 = vcmask 523264   ;;  %v760_v42 = vlaneseq  ;;  %s4490_s18 = scalar_lea.vmem %s4457_s9, %s3938_s23 }
 0x15e   : > { %851 = vmatprep.mubr.bf16.mxu1 %v3833_v34  ;;  %819 = vmatprep.subr.bf16.mxu1 %v3750_v32  ;;  %v3753_v35 = vld [vmem:[%s3945_s28 + $0x14] ss:$8 sps:$4 sm:$0xff]   ;;  %v3755_v36 = vld [vmem:[%s3945_s28 + $0x10] ss:$8 sps:$4 sm:$0xff]   ;;  %v3756_v37 = vld [vmem:[%s3945_s28 + $0x24] ss:$8 sps:$4 sm:$0xff]   ;;  %v4054_v16 = vpack.i.b16 %v3833_v34, %v3833_v34 }
 0x15f   : > { %820 = vmatpush1.bf16.msra.mxu1 %v3752_v33  ;;  %v3758_v38 = vld [vmem:[%s3945_s28 + $0x20] ss:$8 sps:$4 sm:$0xff]   ;;  %v3759_v39 = vld [vmem:[%s3945_s28 + $0x34] ss:$8 sps:$4 sm:$0xff]   ;;  %v3761_v40 = vld [vmem:[%s3945_s28 + $0x30] ss:$8 sps:$4 sm:$0xff]  }
 0x160   : > { %821 = vmatprep.subr.bf16.mxu1 %v3753_v35  ;;  %s4486_s21 = sld [smem:[#allocation10_spill]]  ;;  %v761_v43 = vshrl.u32 %v760_v42, 7  ;;  %v758_v45 = vld [vmem:[%s3950_s0] sm:$0x3]  ;;  %s3834_s28 = smov 80   ;;  %v3838_v1 = vmov 0.0  }
 0x161   : > { %s3835_s0 = smov 112   ;;  %s3836_s2 = smov 64   ;;  %3583 = vmatprep.subr.bf16.mxu0 %v3838_v1  ;;  %vm3839_vm3 = vmmov 0   ;;  %v3840_v2 = vmov 1983009808   ;;  %vm1718_vm4 = vcmask 130048  }
 0x162   : > { %v762_v44 = vsub.s32 0, %v761_v43  ;;  %v766_v46 = vsub.s32 1, %v761_v43  ;;  %s3837_s3 = smov 96   ;;  %3585 = vmatprep.mubr.msk.bf16.mxu0 %vm3839_vm3, %v3838_v1  ;;  %v896_v3 = vunpack.c.l.s4 %v3840_v2  ;;  %v3841_v4 = vmov 1934713408   ;;  %s4487_s25 = sld [smem:[#allocation4_spill]] }
 0x163   : > { %822 = vmatpush1.bf16.msra.mxu1 %v3755_v36  ;;  %v927_v5 = vunpack.c.l.s4 %v3841_v4  ;;  %vm2109_vm5 = vcmask 64512   ;;  %vm2201_vm6 = vcmask 1043456   ;;  %s3842_s19 = smov 32   ;;  %s3843_s24 = smov 16   ;;  %vm2873_vm7 = vcmask 261120  }
 0x164   : > { %823 = vmatprep.subr.bf16.mxu1 %v3756_v37  ;;  %v763_v47 = vrot.slane %v758_v45, %v762_v44  ;;  %v767_v49 = vrot.slane %v758_v45, %v766_v46  ;;  %v897_v6 = vunpack.c.0.s8 %v896_v3  ;;  %s3844_s1 = smov 48   ;;  %vm2876_vm8 = vcmask 392192  }
 0x165   : > { %v928_v9 = vunpack.c.0.s8 %v927_v5  ;;  %vm3279_vm9 = vcmask 519168  }
 0x166   : > { %v746_v41 = vld [vmem:[%s4486_s21] sm:$0xff]   ;;  %v4050_v11 = vsub.s32 %v897_v6, %v761_v43 }
 0x167   : > { %824 = vmatpush1.bf16.msra.mxu1 %v3758_v38  ;;  %v4056_v20 = vsub.s32 %v928_v9, %v761_v43 }
 0x168   : > { %825 = vmatprep.subr.bf16.mxu1 %v3759_v39 }
 0x16b   : > { %826 = vmatpush1.bf16.msra.mxu1 %v3761_v40 }
 0x16c   : > { %3571 = vmatprep.subr.bf16.mxu1 %v3838_v1 }
 0x16e   : > { %3448 = vmatmul.mubr.msk.bf16.vlgmr.msra.gmra.mrb[0].mxu1 %vm815_vm2, %v746_v41 }
 0x16f   : > { %3573 = vmatprep.mubr.msk.bf16.mxu1 %vm3839_vm3, %v3838_v1 }
 0x241   : > { %v853_v48 = vpop.f32.mrb[0].mxu1 }
 0x242   : > { %v854_v50 = vadd.f32 %v853_v48, %v763_v47  ;;  %v855_v51 = vpop.f32.mrb[1].mxu1 }
 0x243   : > { %v857_v52 = vpop.f32.mrb[2].mxu1  ;;  %v856_v55 = vadd.f32 %v855_v51, %v767_v49 }
 0x244   : > { %v858_v53 = vadd.f32 %v857_v52, %v763_v47  ;;  %v859_v54 = vpop.f32.mrb[3].mxu1  ;;  %v862_v57 = vmul.f32 0.25, %v854_v50 }
 0x245   : > { %v860_v56 = vadd.f32 %v859_v54, %v767_v49 }
 0x246   : > { %v863_v58 = vmul.f32 0.25, %v858_v53  ;;  %v1150_v59 = vpack.c.bf16 %v858_v53, %v854_v50 }
 0x247   : > { %v4032_v60 = vpack.c.bf16 %v860_v56, %v856_v55 }
 0x248   : > { %v4034_v61 = vpack.c.bf16 %v863_v58, %v862_v57  ;;  %1156 = vrot.lane.b32.xlu1 %v1150_v59, %s3834_s28  ;;  %1152 = vrot.lane.b32.xlu0 %v1150_v59, %s3835_s0 }
 0x24a   : > { %v876_v49 = vshrl.u32 %v4034_v61, 16 }
 0x24c   : > { %1158 = vrot.lane.b32.xlu1 %v1150_v59, %s3836_s2  ;;  %1154 = vrot.lane.b32.xlu0 %v1150_v59, %s3837_s3 }
 0x2ba   : > { %v1153_v62 = vpop.permute.xlu0 %1152  ;;  %v1157_v63 = vpop.permute.xlu1 %1156 }
 0x2bb   : > { %1160 = vrot.lane.b32.xlu0 %v1153_v62, %s3836_s2 }
 0x2be   : > { %v1155_v0 = vpop.permute.xlu0 %1154  ;;  %v1159_v7 = vpop.permute.xlu1 %1158 }
 0x2bf   : > { %1164 = vrot.lane.b32.xlu0 %v1157_v63, %s3836_s2  ;;  %1162 = vrot.lane.b32.xlu1 %v1155_v0, %s3836_s2  ;;  %v1170_v15 = vshrl.u32 %v1159_v7, 16 }
 0x2c3   : > { %868 = vrot.lane.b32.xlu0 %v4034_v61, %s3837_s3  ;;  %866 = vrot.lane.b32.xlu1 %v4034_v61, %s3835_s0 }
 0x2c7   : > { %1440 = vrot.lane.b32.xlu0 %v4032_v60, %s3835_s0  ;;  %870 = vrot.lane.b32.xlu1 %v4034_v61, %s3834_s28 }
 0x32d   : > { %v1161_v8 = vpop.permute.xlu0 %1160 }
 0x32e   : > { %v1171_v10 = vshrl.u32 %v1161_v8, 16  ;;  %v1168_v12 = vpack.i.b16 %v1161_v8, %v1159_v7 }
 0x330   : > { %v1172_v21 = vpack.i.b16 %v1171_v10, %v1170_v15  ;;  %v1189_v22 = vrot.slane %v1168_v12, %v4050_v11  ;;  %v1182_v26 = vcombine.high %v1168_v12, %v4054_v16 }
 0x331   : > { %v1163_v13 = vpop.permute.xlu1 %1162  ;;  %v1165_v14 = vpop.permute.xlu0 %1164 }
 0x332   : > { %v1178_v17 = vshrl.u32 %v1163_v13, 16  ;;  %v1176_v18 = vpack.i.b16 %v1165_v14, %v1163_v13  ;;  %v1179_v19 = vshrl.u32 %v1165_v14, 16  ;;  %v1255_v30 = vrot.slane %v1172_v21, %v4050_v11 }
 0x333   : > { %v1196_v37 = vrot.slane %v1182_v26, %v4050_v11  ;;  %v1248_v48 = vcombine.high %v1172_v21, %v4054_v16 }
 0x334   : > { %v1180_v23 = vpack.i.b16 %v1179_v19, %v1178_v17  ;;  %v1197_v24 = vcombine.high %v1176_v18, %v4054_v16  ;;  %v1204_v25 = vrot.slane %v1176_v18, %v4050_v11 }
 0x335   : > { %v867_v27 = vpop.permute.xlu1 %866  ;;  %v869_v55 = vpop.permute.xlu0 %868  ;;  %v1262_v0 = vrot.slane %v1248_v48, %v4050_v11 }
 0x336   : > { %v1212_v28 = vcombine.low %v1189_v22, %v1204_v25  ;;  %v1213_v29 = vcombine.high %v1189_v22, %v1204_v25  ;;  %v1211_v31 = vrot.slane %v1197_v24, %v4050_v11  ;;  %v1270_v32 = vrot.slane %v1180_v23, %v4050_v11 }
 0x337   : > { %v874_v36 = vpack.i.b16 %v867_v27, %v4034_v61  ;;  %v1263_v40 = vcombine.high %v1180_v23, %v4054_v16  ;;  %v877_v43 = vshrl.u32 %v867_v27, 16  ;;  %v884_v2 = vshrl.u32 %v869_v55, 16 }
 0x338   : > { %v1220_v33 = vrot.slane %v1212_v28, %v4056_v20  ;;  %v1227_v35 = vrot.slane %v1213_v29, %v4056_v20  ;;  %v1278_v38 = vcombine.low %v1255_v30, %v1270_v32  ;;  %v1279_v39 = vcombine.high %v1255_v30, %v1270_v32 }
 0x339   : > { %v1228_v44 = vcombine.low %v1196_v37, %v1211_v31  ;;  %v1229_v45 = vcombine.high %v1196_v37, %v1211_v31  ;;  %v894_v50 = vcombine.high %v874_v36, %v4054_v16  ;;  %v871_v56 = vpop.permute.xlu1 %870  ;;  %v1277_v57 = vrot.slane %v1263_v40, %v4050_v11 }
 0x33a   : > { %v1314_v41 = vcombine.low %v1220_v33, %v1227_v35  ;;  %v3453_v42 = vcombine.high %v1220_v33, %v1227_v35  ;;  %v1286_v46 = vrot.slane %v1278_v38, %v4056_v20  ;;  %v1293_v47 = vrot.slane %v1279_v39, %v4056_v20 }
 0x33b   : > { %v878_v58 = vpack.i.b16 %v877_v43, %v876_v49  ;;  %v1236_v59 = vrot.slane %v1228_v44, %v4056_v20  ;;  %v1243_v62 = vrot.slane %v1229_v45, %v4056_v20  ;;  %v901_v3 = vrot.slane %v874_v36, %v4050_v11 }
 0x33c   : > { %v1321_v51 = vrot.slane %v1314_v41, %v4050_v11  ;;  %v1329_v52 = vrot.slane %v3453_v42, %v4050_v11  ;;  %v1339_v53 = vcombine.low %v1286_v46, %v1293_v47  ;;  %v3454_v54 = vcombine.high %v1286_v46, %v1293_v47 }
 0x33d   : > { %v882_v4 = vpack.i.b16 %v871_v56, %v869_v55  ;;  %v908_v5 = vrot.slane %v894_v50, %v4050_v11  ;;  %v885_v6 = vshrl.u32 %v871_v56, 16  ;;  %v1294_v9 = vcombine.low %v1262_v0, %v1277_v57 }
 0x33e   : > { %v1346_v61 = vrot.slane %v1339_v53, %v4050_v11  ;;  %v1354_v63 = vrot.slane %v3454_v54, %v4050_v11  ;;  %v1330_v7 = vcombine.low %v1321_v51, %v1329_v52  ;;  %v1295_v10 = vcombine.high %v1262_v0, %v1277_v57 }
 0x33f   : > { %v960_v12 = vcombine.high %v878_v58, %v4054_v16  ;;  %v909_v13 = vcombine.high %v882_v4, %v4054_v16  ;;  %v1364_v14 = vcombine.low %v1236_v59, %v1243_v62  ;;  %v886_v15 = vpack.i.b16 %v885_v6, %v884_v2 }
 0x340   : > { %v1355_v8 = vcombine.low %v1346_v61, %v1354_v63  ;;  %v916_v17 = vrot.slane %v882_v4, %v4050_v11  ;;  %v3455_v19 = vcombine.high %v1236_v59, %v1243_v62  ;;  %v967_v21 = vrot.slane %v878_v58, %v4050_v11 }
 0x341   : > { %v923_v22 = vrot.slane %v909_v13, %v4050_v11  ;;  %v1337_v23 = vrot.slane %v1330_v7, %v4056_v20  ;;  %v975_v26 = vcombine.high %v886_v15, %v4054_v16  ;;  %v982_v27 = vrot.slane %v886_v15, %v4050_v11 }
 0x342   : > { %v4089_v18 = vrot.slane %v1355_v8, %v4056_v20  ;;  %v924_v24 = vcombine.low %v901_v3, %v916_v17  ;;  %v925_v25 = vcombine.high %v901_v3, %v916_v17  ;;  %v1302_v28 = vrot.slane %v1294_v9, %v4056_v20 }
 0x343   : > { %v974_v29 = vrot.slane %v960_v12, %v4050_v11  ;;  %v940_v30 = vcombine.low %v908_v5, %v923_v22  ;;  %v989_v35 = vrot.slane %v975_v26, %v4050_v11  ;;  %v990_v36 = vcombine.low %v967_v21, %v982_v27 }
 0x344   : > { %v1416_v31 = vpack.i.b16 %v4089_v18, %v1337_v23  ;;  %v932_v32 = vrot.slane %v924_v24, %v4056_v20  ;;  %v939_v33 = vrot.slane %v925_v25, %v4056_v20  ;;  %v1309_v37 = vrot.slane %v1295_v10, %v4056_v20 }
 0x345   : > { %v941_v38 = vcombine.high %v908_v5, %v923_v22  ;;  %v991_v39 = vcombine.high %v967_v21, %v982_v27  ;;  %v998_v41 = vrot.slane %v990_v36, %v4056_v20  ;;  %v1006_v42 = vcombine.low %v974_v29, %v989_v35 }
 0x346   : > { %v1723_v40 = vsel %vm1718_vm4, %v1416_v31, 0  ;;  %v1007_v43 = vcombine.high %v974_v29, %v989_v35  ;;  %v1026_v44 = vcombine.low %v932_v32, %v939_v33  ;;  %v1371_v45 = vrot.slane %v1364_v14, %v4050_v11 }
 0x347   : > { %3572 = vmatpush3.bf16.xpose.msra.mxu1 %v1723_v40  ;;  %v1005_v46 = vrot.slane %v991_v39, %v4056_v20  ;;  %v3449_v47 = vcombine.high %v932_v32, %v939_v33  ;;  %v948_v48 = vrot.slane %v940_v30, %v4056_v20  ;;  %v1014_v49 = vrot.slane %v1006_v42, %v4056_v20 }
 0x348   : > { %3577 = vmatprep.subr.bf16.mxu1 %v3838_v1  ;;  %v1021_v50 = vrot.slane %v1007_v43, %v4056_v20  ;;  %v1033_v51 = vrot.slane %v1026_v44, %v4050_v11  ;;  %v955_v52 = vrot.slane %v941_v38, %v4056_v20  ;;  %v1379_v56 = vrot.slane %v3455_v19, %v4050_v11 }
 0x349   : > { %v1041_v53 = vrot.slane %v3449_v47, %v4050_v11  ;;  %v1051_v54 = vcombine.low %v998_v41, %v1005_v46  ;;  %v3450_v55 = vcombine.high %v998_v41, %v1005_v46  ;;  %v1389_v57 = vcombine.low %v1302_v28, %v1309_v37 }
 0x34a   : > { %v1338_v58 = vcombine.high %v1337_v23, %v3833_v34  ;;  %v1363_v59 = vcombine.high %v4089_v18, %v3833_v34  ;;  %v3456_v62 = vcombine.high %v1302_v28, %v1309_v37  ;;  %v1101_v2 = vcombine.low %v1014_v49, %v1021_v50 }
 0x34b   : > { %v1042_v61 = vcombine.low %v1033_v51, %v1041_v53  ;;  %v1058_v63 = vrot.slane %v1051_v54, %v4050_v11  ;;  %v1066_v0 = vrot.slane %v3450_v55, %v4050_v11  ;;  %v3452_v3 = vcombine.high %v1014_v49, %v1021_v50 }
 0x34c   : > { %v1422_v4 = vpack.i.b16 %v1363_v59, %v1338_v58  ;;  %v1076_v7 = vcombine.low %v948_v48, %v955_v52  ;;  %v3451_v8 = vcombine.high %v948_v48, %v955_v52  ;;  %v1417_v10 = vshrl.u32 %v1337_v23, 16 }
 0x34d   : > { %v1049_v5 = vrot.slane %v1042_v61, %v4056_v20  ;;  %v1067_v6 = vcombine.low %v1058_v63, %v1066_v0  ;;  %v1418_v12 = vshrl.u32 %v4089_v18, 16  ;;  %v1380_v14 = vcombine.low %v1371_v45, %v1379_v56 }
 0x34e   : > { %v1815_v9 = vsel %vm1718_vm4, %v1422_v4, 0  ;;  %v1396_v15 = vrot.slane %v1389_v57, %v4050_v11  ;;  %v1404_v17 = vrot.slane %v3456_v62, %v4050_v11  ;;  %v1108_v19 = vrot.slane %v1101_v2, %v4050_v11 }
 0x34f   : > { %3584 = vmatpush3.bf16.xpose.msra.mxu0 %v1815_v9  ;;  %v1074_v13 = vrot.slane %v1067_v6, %v4056_v20  ;;  %v1116_v21 = vrot.slane %v3452_v3, %v4050_v11  ;;  %v1419_v22 = vpack.i.b16 %v1418_v12, %v1417_v10  ;;  %v1050_v23 = vcombine.high %v1049_v5, %v3833_v34  ;;  %v3469_v9 = vld [vmem:[%s4487_s25] ss:$0 sm:$0xff] }
 0x350   : > { %3595 = vmatprep.subr.bf16.mxu0 %v3838_v1  ;;  %v1405_v25 = vcombine.low %v1396_v15, %v1404_v17  ;;  %v1083_v26 = vrot.slane %v1076_v7, %v4050_v11  ;;  %v1091_v27 = vrot.slane %v3451_v8, %v4050_v11  ;;  %v1424_v28 = vshrl.u32 %v1363_v59, 16 }
 0x351   : > { %v1128_v24 = vpack.i.b16 %v1074_v13, %v1049_v5  ;;  %v1075_v18 = vcombine.high %v1074_v13, %v3833_v34  ;;  %v1769_v29 = vsel %vm1718_vm4, %v1419_v22, 0  ;;  %v1387_v31 = vrot.slane %v1380_v14, %v4056_v20 }
 0x352   : > { %v1412_v32 = vrot.slane %v1405_v25, %v4056_v20  ;;  %v1117_v33 = vcombine.low %v1108_v19, %v1116_v21  ;;  %v1423_v35 = vshrl.u32 %v1338_v58, 16  ;;  %v1130_v37 = vshrl.u32 %v1074_v13, 16 }
 0x353   : > { %3574 = vmatmul.mubr.msk.bf16.vlgmr.msra.gmra.mrb[4].mxu1 %vm1718_vm4, %v1128_v24  ;;  %v1134_v30 = vpack.i.b16 %v1075_v18, %v1050_v23  ;;  %v1092_v38 = vcombine.low %v1083_v26, %v1091_v27  ;;  %v1129_v40 = vshrl.u32 %v1049_v5, 16  ;;  %v1388_v45 = vcombine.high %v1387_v31, %v3833_v34 }
 0x354   : > { %3578 = vmatpush3.bf16.xpose.msra.mxu1 %v1769_v29  ;;  %3579 = vmatprep.mubr.msk.bf16.mxu1 %vm3839_vm3, %v3838_v1  ;;  %v1428_v36 = vpack.i.b16 %v1412_v32, %v1387_v31  ;;  %v1425_v41 = vpack.i.b16 %v1424_v28, %v1423_v35  ;;  %v1413_v42 = vcombine.high %v1412_v32, %v3833_v34  ;;  %v1430_v49 = vshrl.u32 %v1412_v32, 16 }
 0x355   : > { %3589 = vmatprep.subr.bf16.mxu1 %v3838_v1  ;;  %v1131_v43 = vpack.i.b16 %v1130_v37, %v1129_v40  ;;  %v1124_v44 = vrot.slane %v1117_v33, %v4056_v20  ;;  %v1099_v47 = vrot.slane %v1092_v38, %v4056_v20  ;;  %v1136_v50 = vshrl.u32 %v1075_v18, 16 }
 0x356   : > { %3586 = vmatmul.mubr.msk.bf16.vlgmr.msra.gmra.mrb[0].mxu0 %vm1718_vm4, %v1134_v30  ;;  %v1907_v39 = vsel %vm1718_vm4, %v1428_v36, 0  ;;  %v1861_v46 = vsel %vm1718_vm4, %v1425_v41, 0  ;;  %v1434_v48 = vpack.i.b16 %v1413_v42, %v1388_v45  ;;  %v1429_v52 = vshrl.u32 %v1387_v31, 16 }
 0x357   : > { %3597 = vmatprep.mubr.msk.bf16.mxu0 %vm3839_vm3, %v3838_v1  ;;  %3596 = vmatpush3.bf16.xpose.msra.mxu0 %v1907_v39  ;;  %v1140_v51 = vpack.i.b16 %v1124_v44, %v1099_v47  ;;  %v1135_v53 = vshrl.u32 %v1050_v23, 16  ;;  %v1125_v57 = vcombine.high %v1124_v44, %v3833_v34  ;;  %v1100_v59 = vcombine.high %v1099_v47, %v3833_v34 }
 0x358   : > { %3607 = vmatprep.subr.bf16.mxu0 %v3838_v1  ;;  %v1999_v54 = vsel %vm1718_vm4, %v1434_v48, 0  ;;  %v1431_v55 = vpack.i.b16 %v1430_v49, %v1429_v52  ;;  %v1436_v62 = vshrl.u32 %v1413_v42, 16  ;;  %v1142_v63 = vshrl.u32 %v1124_v44, 16 }
 0x359   : > { %v1137_v56 = vpack.i.b16 %v1136_v50, %v1135_v53  ;;  %v1146_v61 = vpack.i.b16 %v1125_v57, %v1100_v59  ;;  %v1435_v0 = vshrl.u32 %v1388_v45, 16  ;;  %v1141_v2 = vshrl.u32 %v1099_v47, 16 }
 0x35a   : > { %v1953_v58 = vsel %vm1718_vm4, %v1431_v55, 0  ;;  %v1148_v6 = vshrl.u32 %v1125_v57, 16  ;;  %v1147_v7 = vshrl.u32 %v1100_v59, 16 }
 0x35b   : > { %3580 = vmatmul.mubr.msk.bf16.vlgmr.msra.gmra.mrb[8].mxu1 %vm1718_vm4, %v1131_v43  ;;  %v1437_v3 = vpack.i.b16 %v1436_v62, %v1435_v0  ;;  %v1143_v4 = vpack.i.b16 %v1142_v63, %v1141_v2  ;;  %v1441_v0 = vpop.permute.xlu0 %1440 }
 0x35c   : > { %3590 = vmatpush3.bf16.xpose.msra.mxu1 %v1861_v46  ;;  %3591 = vmatprep.mubr.msk.bf16.mxu1 %vm3839_vm3, %v3838_v1  ;;  %v1149_v8 = vpack.i.b16 %v1148_v6, %v1147_v7  ;;  %v1451_v7 = vshrl.u32 %v1441_v0, 16 }
 0x35d   : > { %3601 = vmatprep.subr.bf16.mxu1 %v3838_v1  ;;  %v2045_v5 = vsel %vm1718_vm4, %v1437_v3, 0 }
 0x35e   : > { %3598 = vmatmul.mubr.msk.bf16.vlgmr.msra.gmra.mrb[4].mxu0 %vm1718_vm4, %v1140_v51  ;;  %v3470_v51 = vld [vmem:[%s4487_s25 + $0x1] ss:$0 sm:$0xff] }
 0x35f   : > { %3608 = vmatpush3.bf16.xpose.msra.mxu0 %v1999_v54  ;;  %3609 = vmatprep.mubr.msk.bf16.mxu0 %vm3839_vm3, %v3838_v1 }
 0x360   : > { %3619 = vmatprep.subr.bf16.mxu0 %v3838_v1 }
 0x363   : > { %3592 = vmatmul.mubr.msk.bf16.vlgmr.msra.gmra.mrb[12].mxu1 %vm1718_vm4, %v1137_v56 }
 0x364   : > { %3602 = vmatpush3.bf16.xpose.msra.mxu1 %v1953_v58  ;;  %3603 = vmatprep.mubr.msk.bf16.mxu1 %vm3839_vm3, %v3838_v1 }
 0x365   : > { %3613 = vmatprep.subr.bf16.mxu1 %v3838_v1 }
 0x366   : > { %3610 = vmatmul.mubr.msk.bf16.vlgmr.msra.gmra.mrb[8].mxu0 %vm1718_vm4, %v1146_v61 }
 0x367   : > { %3621 = vmatprep.mubr.msk.bf16.mxu0 %vm3839_vm3, %v3838_v1 }
 0x36b   : > { %3604 = vmatmul.mubr.msk.bf16.vlgmr.msra.gmra.mrb[16].mxu1 %vm1718_vm4, %v1143_v4 }
 0x36c   : > { %3614 = vmatpush3.bf16.xpose.msra.mxu1 %v2045_v5  ;;  %3615 = vmatprep.mubr.msk.bf16.mxu1 %vm3839_vm3, %v3838_v1 }
 0x36d   : > { %3625 = vmatprep.subr.bf16.mxu1 %v3838_v1 }
 0x373   : > { %3616 = vmatmul.mubr.msk.bf16.vlgmr.msra.gmra.mrb[20].mxu1 %vm1718_vm4, %v1149_v8 }
 0x374   : > { %3627 = vmatprep.mubr.msk.bf16.mxu1 %vm3839_vm3, %v3838_v1 }
 0x426   : > { %v1759_v10 = vpop.f32.mrb[4].mxu1 }
 0x427   : > { %v2101_v12 = vadd.f32 %v3469_v9, %v1759_v10  ;;  %v3575_v13 = vpop.f32.mrb[5].mxu1 }
 0x428   : > { %v1762_v14 = vpop.f32.mrb[6].mxu1  ;;  %v1450_v13 = vshrl.u32 %v4032_v60, 16 }
 0x429   : > { %v1851_v15 = vpop.f32.mrb[0].mxu0  ;;  %v3576_v17 = vpop.f32.mrb[7].mxu1  ;;  %v2110_v19 = vsel %vm2109_vm5, %v2101_v12, -inf }
 0x42a   : > { %v3587_v21 = vpop.f32.mrb[1].mxu0  ;;  %2111 = vmax.xlane.f32.xlu0 %v2110_v19  ;;  %v4195_v54 = vadd.f32 %v3469_v9, %v1851_v15 }
 0x42b   : > { %v1854_v22 = vpop.f32.mrb[2].mxu0  ;;  %v1452_v21 = vpack.i.b16 %v1451_v7, %v1450_v13 }
 0x42c   : > { %v3588_v24 = vpop.f32.mrb[3].mxu0  ;;  %v2116_v58 = vsel %vm2109_vm5, %v4195_v54, -inf }
 0x42e   : > { %v1805_v23 = vpop.f32.mrb[8].mxu1 }
 0x42f   : > { %v2102_v18 = vadd.f32 %v3469_v9, %v1805_v23  ;;  %v3581_v25 = vpop.f32.mrb[9].mxu1 }
 0x430   : > { %v1808_v26 = vpop.f32.mrb[10].mxu1 }
 0x431   : > { %v3582_v27 = vpop.f32.mrb[11].mxu1  ;;  %v2113_v28 = vsel %vm2109_vm5, %v2102_v18, -inf  ;;  %v1943_v29 = vpop.f32.mrb[4].mxu0 }
 0x432   : > { %2114 = vmax.xlane.f32.xlu1 %v2113_v28  ;;  %v3599_v30 = vpop.f32.mrb[5].mxu0  ;;  %v4191_v52 = vadd.f32 %v3470_v51, %v1943_v29 }
 0x433   : > { %v1946_v31 = vpop.f32.mrb[6].mxu0 }
 0x434   : > { %v3600_v32 = vpop.f32.mrb[7].mxu0  ;;  %v2122_v56 = vsel %vm2109_vm5, %v4191_v52, -inf }
 0x436   : > { %v1897_v33 = vpop.f32.mrb[12].mxu1 }
 0x437   : > { %v3593_v35 = vpop.f32.mrb[13].mxu1  ;;  %v4186_v50 = vadd.f32 %v3469_v9, %v1897_v33  ;;  %v4214_v9 = vpack.i.b16 %v1441_v0, %v4032_v60 }
 0x438   : > { %v1900_v36 = vpop.f32.mrb[14].mxu1 }
 0x439   : > { %v3594_v37 = vpop.f32.mrb[15].mxu1  ;;  %v2035_v38 = vpop.f32.mrb[8].mxu0  ;;  %v2119_v53 = vsel %vm2109_vm5, %v4186_v50, -inf }
 0x43a   : > { %v3611_v39 = vpop.f32.mrb[9].mxu0  ;;  %v4197_v55 = vadd.f32 %v3470_v51, %v2035_v38 }
 0x43b   : > { %v2038_v40 = vpop.f32.mrb[10].mxu0 }
 0x43c   : > { %v3612_v41 = vpop.f32.mrb[11].mxu0  ;;  %v2128_v59 = vsel %vm2109_vm5, %v4197_v55, -inf }
 0x43e   : > { %v1989_v42 = vpop.f32.mrb[16].mxu1 }
 0x43f   : > { %v3605_v43 = vpop.f32.mrb[17].mxu1  ;;  %v4201_v57 = vadd.f32 %v3470_v51, %v1989_v42 }
 0x440   : > { %1444 = vrot.lane.b32.xlu0 %v4032_v60, %s3834_s28  ;;  %v1992_v44 = vpop.f32.mrb[18].mxu1  ;;  %s4488_s28 = scalar_lea.vmem %s4455_s7, %s3938_s23 }
 0x441   : > { %v3606_v45 = vpop.f32.mrb[19].mxu1  ;;  %v2125_v61 = vsel %vm2109_vm5, %v4201_v57, -inf }
 0x443   : > { %1442 = vrot.lane.b32.xlu1 %v4032_v60, %s3837_s3  ;;  %v1535_v60 = vrot.slane %v1452_v21, %v4050_v11 }
 0x446   : > { %v2081_v46 = vpop.f32.mrb[20].mxu1 }
 0x447   : > { %v3617_v47 = vpop.f32.mrb[21].mxu1  ;;  %v4207_v62 = vadd.f32 %v3470_v51, %v2081_v46 }
 0x448   : > { %v2084_v48 = vpop.f32.mrb[22].mxu1 }
 0x449   : > { %v3618_v49 = vpop.f32.mrb[23].mxu1  ;;  %v2131_v63 = vsel %vm2109_vm5, %v4207_v62, -inf }
 0x45f   : > { %2120 = vmax.xlane.f32.xlu0 %v2119_v53 }
 0x463   : > { %2123 = vmax.xlane.f32.xlu0 %v2122_v56 }
 0x467   : > { %2117 = vmax.xlane.f32.xlu1 %v2116_v58  ;;  %2129 = vmax.xlane.f32.xlu0 %v2128_v59 }
 0x46b   : > { %2126 = vmax.xlane.f32.xlu1 %v2125_v61  ;;  %v1528_v61 = vcombine.high %v1452_v21, %v4054_v16 }
 0x46f   : > { %2132 = vmax.xlane.f32.xlu1 %v2131_v63 }
 0x4b7   : > { %v2112_v2 = vpop.xlane.xlu0 %2111 }
 0x4b8   : > { %v2134_v3 = vsub.f32 %v2101_v12, %v2112_v2  ;;  %v1469_v12 = vrot.slane %v4214_v9, %v4050_v11 }
 0x4ba   : > { %v2142_v4 = vmul.f32 1.442695, %v2134_v3 }
 0x4bb   : > { %v1445_v8 = vpop.permute.xlu0 %1444 }
 0x4bc   : > { %3780 = vpow2.f32 %v2142_v4  ;;  %v1459_v15 = vshrl.u32 %v1445_v8, 16 }
 0x4bf   : > { %v2115_v5 = vpop.xlane.xlu1 %2114 }
 0x4c0   : > { %v2135_v6 = vsub.f32 %v2102_v18, %v2115_v5 }
 0x4c2   : > { %v2144_v10 = vmul.f32 1.442695, %v2135_v6  ;;  %v1462_v6 = vcombine.high %v4214_v9, %v4054_v16 }
 0x4c3   : > { %v1443_v14 = vpop.permute.xlu1 %1442 }
 0x4c4   : > { %3782 = vpow2.f32 %v2144_v10  ;;  %v1456_v17 = vpack.i.b16 %v1445_v8, %v1443_v14  ;;  %v1458_v19 = vshrl.u32 %v1443_v14, 16  ;;  %v1542_v14 = vrot.slane %v1528_v61, %v4050_v11 }
 0x4c6   : > { %v3781_v22 = vpop.eup %3780  ;;  %v1460_v24 = vpack.i.b16 %v1459_v15, %v1458_v19  ;;  %v1484_v23 = vrot.slane %v1456_v17, %v4050_v11  ;;  %v1477_v63 = vcombine.high %v1456_v17, %v4054_v16 }
 0x4c7   : > { %v2158_v18 = vsel %vm2109_vm5, %v3781_v22, 0.0  ;;  %v2190_v10 = vpack.c.bf16 %v3781_v22, %v3781_v22 }
 0x4c8   : > { %v1492_v25 = vcombine.low %v1469_v12, %v1484_v23  ;;  %v1493_v26 = vcombine.high %v1469_v12, %v1484_v23  ;;  %2159 = vadd.xlane.f32.xlu0 %v2158_v18  ;;  %v1550_v27 = vrot.slane %v1460_v24, %v4050_v11  ;;  %v1543_v51 = vcombine.high %v1460_v24, %v4054_v16 }
 0x4c9   : > { %v1491_v15 = vrot.slane %v1477_v63, %v4050_v11  ;;  %v1476_v16 = vrot.slane %v1462_v6, %v4050_v11 }
 0x4ca   : > { %v1500_v28 = vrot.slane %v1492_v25, %v4056_v20  ;;  %v1507_v29 = vrot.slane %v1493_v26, %v4056_v20  ;;  %v1558_v30 = vcombine.low %v1535_v60, %v1550_v27  ;;  %v1559_v31 = vcombine.high %v1535_v60, %v1550_v27 }
 0x4cb   : > { %v1557_v7 = vrot.slane %v1543_v51, %v4050_v11  ;;  %v1508_v12 = vcombine.low %v1476_v16, %v1491_v15  ;;  %v1509_v24 = vcombine.high %v1476_v16, %v1491_v15 }
 0x4cc   : > { %v1594_v32 = vcombine.low %v1500_v28, %v1507_v29  ;;  %v3457_v33 = vcombine.high %v1500_v28, %v1507_v29  ;;  %v1566_v35 = vrot.slane %v1558_v30, %v4056_v20  ;;  %v1573_v36 = vrot.slane %v1559_v31, %v4056_v20 }
 0x4cd   : > { %v1574_v9 = vcombine.low %v1542_v14, %v1557_v7  ;;  %v1575_v21 = vcombine.high %v1542_v14, %v1557_v7  ;;  %v1516_v25 = vrot.slane %v1508_v12, %v4056_v20  ;;  %v1523_v26 = vrot.slane %v1509_v24, %v4056_v20 }
 0x4ce   : > { %v3783_v37 = vpop.eup %3782  ;;  %v1601_v38 = vrot.slane %v1594_v32, %v4050_v11  ;;  %v1609_v39 = vrot.slane %v3457_v33, %v4050_v11  ;;  %v1619_v40 = vcombine.low %v1566_v35, %v1573_v36  ;;  %v3458_v41 = vcombine.high %v1566_v35, %v1573_v36 }
 0x4cf   : > { %v2161_v42 = vsel %vm2109_vm5, %v3783_v37, 0.0  ;;  %v2191_v19 = vpack.c.bf16 %v3783_v37, %v3783_v37  ;;  %v1582_v23 = vrot.slane %v1574_v9, %v4056_v20  ;;  %v1589_v18 = vrot.slane %v1575_v21, %v4056_v20 }
 0x4d0   : > { %v1610_v43 = vcombine.low %v1601_v38, %v1609_v39  ;;  %v1626_v44 = vrot.slane %v1619_v40, %v4050_v11  ;;  %v1634_v45 = vrot.slane %v3458_v41, %v4050_v11  ;;  %2162 = vadd.xlane.f32.xlu1 %v2161_v42  ;;  %v1644_v28 = vcombine.low %v1516_v25, %v1523_v26 }
 0x4d1   : > { %v1669_v60 = vcombine.low %v1582_v23, %v1589_v18  ;;  %v3460_v27 = vcombine.high %v1582_v23, %v1589_v18  ;;  %v3459_v29 = vcombine.high %v1516_v25, %v1523_v26 }
 0x4d2   : > { %v1617_v46 = vrot.slane %v1610_v43, %v4056_v20  ;;  %v1635_v47 = vcombine.low %v1626_v44, %v1634_v45  ;;  %v1651_v32 = vrot.slane %v1644_v28, %v4050_v11  ;;  %v3764_v28 = vld [vmem:[%s3960_s16 + $0x8] sm:$0xff]  }
 0x4d3   : > { %v1676_v30 = vrot.slane %v1669_v60, %v4050_v11  ;;  %v1684_v31 = vrot.slane %v3460_v27, %v4050_v11  ;;  %v1659_v33 = vrot.slane %v3459_v29, %v4050_v11  ;;  %v3763_v27 = vld [vmem:[%s3960_s16] sm:$0xff]  }
 0x4d4   : > { %v1618_v48 = vcombine.high %v1617_v46, %v3833_v34  ;;  %v1642_v49 = vrot.slane %v1635_v47, %v4056_v20  ;;  %v1697_v56 = vshrl.u32 %v1617_v46, 16 }
 0x4d5   : > { %v1685_v37 = vcombine.low %v1676_v30, %v1684_v31  ;;  %v1660_v40 = vcombine.low %v1651_v32, %v1659_v33 }
 0x4d6   : > { %v1696_v53 = vpack.i.b16 %v1642_v49, %v1617_v46  ;;  %v1698_v58 = vshrl.u32 %v1642_v49, 16  ;;  %v1643_v59 = vcombine.high %v1642_v49, %v3833_v34  ;;  %v1703_v0 = vshrl.u32 %v1618_v48, 16 }
 0x4d7   : > { %v1692_v41 = vrot.slane %v1685_v37, %v4056_v20  ;;  %v1667_v45 = vrot.slane %v1660_v40, %v4056_v20 }
 0x4d8   : > { %v2203_v2 = vsel %vm2201_vm6, %v1696_v53, 0  ;;  %v1699_v3 = vpack.i.b16 %v1698_v58, %v1697_v56  ;;  %v1702_v4 = vpack.i.b16 %v1643_v59, %v1618_v48  ;;  %v1704_v5 = vshrl.u32 %v1643_v59, 16 }
 0x4d9   : > { %3620 = vmatpush3.bf16.msra.mxu0 %v2203_v2  ;;  %v1710_v47 = vshrl.u32 %v1692_v41, 16  ;;  %v1709_v53 = vshrl.u32 %v1667_v45, 16 }
 0x4da   : > { %v2249_v8 = vsel %vm2201_vm6, %v1699_v3, 0  ;;  %3631 = vmatprep.subr.bf16.mxu0 %v3838_v1  ;;  %v1705_v13 = vpack.i.b16 %v1704_v5, %v1703_v0  ;;  %v2295_v17 = vsel %vm2201_vm6, %v1702_v4, 0  ;;  %v1693_v3 = vcombine.high %v1692_v41, %v3833_v34 }
 0x4db   : > { %3626 = vmatpush3.bf16.msra.mxu1 %v2249_v8  ;;  %v1711_v58 = vpack.i.b16 %v1710_v47, %v1709_v53  ;;  %v1668_v4 = vcombine.high %v1667_v45, %v3833_v34  ;;  %v1708_v5 = vpack.i.b16 %v1692_v41, %v1667_v45 }
 0x4dc   : > { %3622 = vmatmul.mubr.msk.bf16.vlgmr.msra.gmra.mrb[12].mxu0 %vm2109_vm5, %v2190_v10  ;;  %3637 = vmatprep.subr.bf16.mxu1 %v3838_v1  ;;  %v2341_v22 = vsel %vm2201_vm6, %v1705_v13, 0 }
 0x4dd   : > { %3632 = vmatpush3.bf16.msra.mxu0 %v2295_v17  ;;  %3633 = vmatprep.mubr.msk.bf16.mxu0 %vm3839_vm3, %v3838_v1  ;;  %v1715_v10 = vshrl.u32 %v1668_v4, 16  ;;  %v2387_v14 = vsel %vm2201_vm6, %v1708_v5, 0 }
 0x4de   : > { %3628 = vmatmul.mubr.msk.bf16.vlgmr.msra.gmra.mrb[24].mxu1 %vm2109_vm5, %v2191_v19  ;;  %3643 = vmatprep.subr.bf16.mxu0 %v3838_v1 }
 0x4df   : > { %3638 = vmatpush3.bf16.msra.mxu1 %v2341_v22  ;;  %3639 = vmatprep.mubr.msk.bf16.mxu1 %vm3839_vm3, %v3838_v1  ;;  %v1714_v22 = vpack.i.b16 %v1693_v3, %v1668_v4 }
 0x4e0   : > { %3649 = vmatprep.subr.bf16.mxu1 %v3838_v1 }
 0x4e1   : > { %v2479_v25 = vsel %vm2201_vm6, %v1714_v22, 0 }
 0x4ec   : > { %v2121_v35 = vpop.xlane.xlu0 %2120 }
 0x4ed   : > { %v2137_v36 = vsub.f32 %v4186_v50, %v2121_v35 }
 0x4ef   : > { %v2148_v38 = vmul.f32 1.442695, %v2137_v36 }
 0x4f0   : > { %v2124_v39 = vpop.xlane.xlu0 %2123 }
 0x4f1   : > { %3784 = vpow2.f32 %v2148_v38  ;;  %v2138_v42 = vsub.f32 %v4191_v52, %v2124_v39 }
 0x4f3   : > { %v2150_v48 = vmul.f32 1.442695, %v2138_v42 }
 0x4f4   : > { %v2118_v43 = vpop.xlane.xlu1 %2117  ;;  %v2130_v44 = vpop.xlane.xlu0 %2129 }
 0x4f5   : > { %v2136_v46 = vsub.f32 %v4195_v54, %v2118_v43  ;;  %v2140_v50 = vsub.f32 %v4197_v55, %v2130_v44  ;;  %v2433_v55 = vsel %vm2201_vm6, %v1711_v58, 0 }
 0x4f7   : > { %v2146_v49 = vmul.f32 1.442695, %v2136_v46  ;;  %v2154_v52 = vmul.f32 1.442695, %v2140_v50 }
 0x4f8   : > { %v2127_v51 = vpop.xlane.xlu1 %2126 }
 0x4f9   : > { %3786 = vpow2.f32 %v2146_v49  ;;  %v2139_v56 = vsub.f32 %v4201_v57, %v2127_v51 }
 0x4fa   : > { %3788 = vpow2.f32 %v2150_v48 }
 0x4fb   : > { %v3785_v59 = vpop.eup %3784  ;;  %v2152_v61 = vmul.f32 1.442695, %v2139_v56 }
 0x4fc   : > { %v2133_v63 = vpop.xlane.xlu1 %2132  ;;  %v2167_v0 = vsel %vm2109_vm5, %v3785_v59, 0.0  ;;  %v2193_v2 = vpack.c.bf16 %v3785_v59, %v3785_v59 }
 0x4fd   : > { %3790 = vpow2.f32 %v2152_v61  ;;  %v2141_v54 = vsub.f32 %v4207_v62, %v2133_v63  ;;  %2168 = vadd.xlane.f32.xlu1 %v2167_v0  ;;  %v1716_v62 = vshrl.u32 %v1693_v3, 16 }
 0x4fe   : > { %3640 = vmatmul.mubr.msk.bf16.vlgmr.msra.gmra.mrb[28].mxu1 %vm2109_vm5, %v2193_v2  ;;  %3792 = vpow2.f32 %v2154_v52 }
 0x4ff   : > { %v2156_v57 = vmul.f32 1.442695, %v2141_v54  ;;  %3650 = vmatpush3.bf16.msra.mxu1 %v2433_v55  ;;  %3651 = vmatprep.mubr.msk.bf16.mxu1 %vm3839_vm3, %v3838_v1  ;;  %v1717_v15 = vpack.i.b16 %v1716_v62, %v1715_v10 }
 0x500   : > { %3661 = vmatprep.subr.bf16.mxu1 %v3838_v1 }
 0x501   : > { %3794 = vpow2.f32 %v2156_v57  ;;  %v2525_v21 = vsel %vm2201_vm6, %v1717_v15, 0 }
 0x503   : > { %v3787_v6 = vpop.eup %3786 }
 0x504   : > { %v2164_v7 = vsel %vm2109_vm5, %v3787_v6, 0.0  ;;  %v2192_v8 = vpack.c.bf16 %v3787_v6, %v3787_v6  ;;  %v3789_v13 = vpop.eup %3788 }
 0x505   : > { %2165 = vadd.xlane.f32.xlu0 %v2164_v7  ;;  %v2170_v19 = vsel %vm2109_vm5, %v3789_v13, 0.0  ;;  %v2194_v18 = vpack.c.bf16 %v3789_v13, %v3789_v13 }
 0x506   : > { %3634 = vmatmul.mubr.msk.bf16.vlgmr.msra.gmra.mrb[16].mxu0 %vm2109_vm5, %v2192_v8 }
 0x507   : > { %v3791_v17 = vpop.eup %3790  ;;  %3644 = vmatpush3.bf16.msra.mxu0 %v2387_v14  ;;  %3645 = vmatprep.mubr.msk.bf16.mxu0 %vm3839_vm3, %v3838_v1 }
 0x508   : > { %v2173_v34 = vsel %vm2109_vm5, %v3791_v17, 0.0  ;;  %v2195_v16 = vpack.c.bf16 %v3791_v17, %v3791_v17  ;;  %3655 = vmatprep.subr.bf16.mxu0 %v3838_v1  ;;  %v3793_v9 = vpop.eup %3792 }
 0x509   : > { %2174 = vadd.xlane.f32.xlu1 %v2173_v34  ;;  %2171 = vadd.xlane.f32.xlu0 %v2170_v19  ;;  %v2176_v23 = vsel %vm2109_vm5, %v3793_v9, 0.0  ;;  %v2196_v60 = vpack.c.bf16 %v3793_v9, %v3793_v9 }
 0x50a   : > { %3652 = vmatmul.mubr.msk.bf16.vlgmr.msra.gmra.mrb[32].mxu1 %vm2109_vm5, %v2195_v16 }
 0x50b   : > { %v3795_v12 = vpop.eup %3794  ;;  %3662 = vmatpush3.bf16.msra.mxu1 %v2525_v21  ;;  %3663 = vmatprep.mubr.msk.bf16.mxu1 %vm3839_vm3, %v3838_v1 }
 0x50c   : > { %v2179_v24 = vsel %vm2109_vm5, %v3795_v12, 0.0  ;;  %3679 = vmatprep.subr.bf16.mxu1 %v3838_v1  ;;  %v2197_v26 = vpack.c.bf16 %v3795_v12, %v3795_v12 }
 0x50d   : > { %2180 = vadd.xlane.f32.xlu1 %v2179_v24  ;;  %2177 = vadd.xlane.f32.xlu0 %v2176_v23 }
 0x50e   : > { %3646 = vmatmul.mubr.msk.bf16.vlgmr.msra.gmra.mrb[20].mxu0 %vm2109_vm5, %v2194_v18 }
 0x50f   : > { %3656 = vmatpush3.bf16.msra.mxu0 %v2479_v25  ;;  %3657 = vmatprep.mubr.msk.bf16.mxu0 %vm3839_vm3, %v3838_v1 }
 0x510   : > { %3667 = vmatprep.subr.bf16.mxu0 %v3838_v1 }
 0x512   : > { %3664 = vmatmul.mubr.msk.bf16.vlgmr.msra.gmra.mrb[36].mxu1 %vm2109_vm5, %v2197_v26 }
 0x513   : > { %3687 = vmatprep.mubr.msk.bf16.mxu1 %vm3839_vm3, %v3838_v1 }
 0x516   : > { %3658 = vmatmul.mubr.msk.bf16.vlgmr.msra.gmra.mrb[24].mxu0 %vm2109_vm5, %v2196_v60 }
 0x517   : > { %3675 = vmatprep.mubr.msk.bf16.mxu0 %vm3839_vm3, %v3838_v1  ;;  %3668 = vmatpush3.bf16.msra.mxu0 %v3763_v27 }
 0x518   : > { %3669 = vmatprep.subr.bf16.mxu0 %v3838_v1 }
 0x51b   : > { %3670 = vmatpush3.bf16.msra.mxu0 %v3764_v28 }
 0x51c   : > { %3671 = vmatprep.subr.bf16.mxu0 %v3838_v1 }
 0x555   : > { %v2160_v40 = vpop.xlane.xlu0 %2159 }
 0x55d   : > { %v2163_v38 = vpop.xlane.xlu1 %2162 }
 0x55e   : > { %3796 = vrcp.f32 %v2163_v38 }
 0x568   : > { %v3797_v42 = vpop.eup %3796 }
 0x58a   : > { %v2169_v39 = vpop.xlane.xlu1 %2168 }
 0x58b   : > { %3798 = vrcp.f32 %v2169_v39 }
 0x58c   : > { %3800 = vrcp.f32 %v2160_v40 }
 0x592   : > { %v2166_v41 = vpop.xlane.xlu0 %2165 }
 0x593   : > { %3802 = vrcp.f32 %v2166_v41 }
 0x595   : > { %v3799_v43 = vpop.eup %3798 }
 0x596   : > { %v2175_v45 = vpop.xlane.xlu1 %2174  ;;  %v2172_v56 = vpop.xlane.xlu0 %2171 }
 0x597   : > { %v3801_v58 = vpop.eup %3800  ;;  %3804 = vrcp.f32 %v2175_v45 }
 0x59a   : > { %v2181_v59 = vpop.xlane.xlu1 %2180  ;;  %v2178_v55 = vpop.xlane.xlu0 %2177 }
 0x59b   : > { %3806 = vrcp.f32 %v2181_v59 }
 0x59c   : > { %3808 = vrcp.f32 %v2172_v56 }
 0x59d   : > { %v3803_v52 = vpop.eup %3802  ;;  %3810 = vrcp.f32 %v2178_v55 }
 0x5a1   : > { %v3805_v18 = vpop.eup %3804 }
 0x5af   : > { %v2239_v29 = vpop.f32.mrb[12].mxu0 }
 0x5b0   : > { %v3623_v30 = vpop.f32.mrb[13].mxu0  ;;  %v2567_v63 = vmul.f32 %v3801_v58, %v2239_v29  ;;  %v3807_v29 = vpop.eup %3806 }
 0x5b1   : > { %v2242_v31 = vpop.f32.mrb[14].mxu0  ;;  %v2285_v32 = vpop.f32.mrb[24].mxu1 }
 0x5b2   : > { %v3624_v33 = vpop.f32.mrb[15].mxu0  ;;  %v3629_v35 = vpop.f32.mrb[25].mxu1  ;;  %v2568_v46 = vmul.f32 %v3797_v42, %v2285_v32 }
 0x5b3   : > { %v2288_v36 = vpop.f32.mrb[26].mxu1  ;;  %v3809_v38 = vpop.eup %3808 }
 0x5b4   : > { %v3630_v37 = vpop.f32.mrb[27].mxu1 }
 0x5d1   : > { %v2377_v44 = vpop.f32.mrb[28].mxu1 }
 0x5d2   : > { %v2570_v47 = vmul.f32 %v3799_v43, %v2377_v44  ;;  %v3641_v48 = vpop.f32.mrb[29].mxu1 }
 0x5d3   : > { %v2380_v49 = vpop.f32.mrb[30].mxu1 }
 0x5d4   : > { %v2591_v50 = vcombine.low %v2568_v46, %v2570_v47  ;;  %v2592_v51 = vcombine.high %v2568_v46, %v2570_v47  ;;  %v3642_v53 = vpop.f32.mrb[31].mxu1  ;;  %v3811_v46 = vpop.eup %3810 }
 0x5d6   : > { %v2599_v62 = vrot.slane %v2591_v50, %v4050_v11  ;;  %v2606_v6 = vrot.slane %v2592_v51, %v4050_v11 }
 0x5d9   : > { %v2331_v61 = vpop.f32.mrb[16].mxu0 }
 0x5da   : > { %v2569_v0 = vmul.f32 %v3803_v52, %v2331_v61  ;;  %v3635_v2 = vpop.f32.mrb[17].mxu0 }
 0x5db   : > { %v2334_v54 = vpop.f32.mrb[18].mxu0 }
 0x5dc   : > { %v2575_v3 = vcombine.low %v2567_v63, %v2569_v0  ;;  %v2576_v57 = vcombine.high %v2567_v63, %v2569_v0  ;;  %v3636_v4 = vpop.f32.mrb[19].mxu0 }
 0x5dd   : > { %v2469_v5 = vpop.f32.mrb[32].mxu1 }
 0x5de   : > { %v2583_v7 = vrot.slane %v2575_v3, %v4050_v11  ;;  %v2590_v8 = vrot.slane %v2576_v57, %v4050_v11  ;;  %v3653_v10 = vpop.f32.mrb[33].mxu1  ;;  %v2572_v30 = vmul.f32 %v3805_v18, %v2469_v5 }
 0x5df   : > { %v2472_v13 = vpop.f32.mrb[34].mxu1 }
 0x5e0   : > { %v2607_v14 = vcombine.low %v2583_v7, %v2599_v62  ;;  %v2608_v15 = vcombine.high %v2583_v7, %v2599_v62  ;;  %v2623_v17 = vcombine.low %v2590_v8, %v2606_v6  ;;  %v2624_v34 = vcombine.high %v2590_v8, %v2606_v6  ;;  %v3654_v19 = vpop.f32.mrb[35].mxu1 }
 0x5e1   : > { %v2423_v16 = vpop.f32.mrb[20].mxu0 }
 0x5e2   : > { %v2615_v9 = vrot.slane %v2607_v14, %v4056_v20  ;;  %v2622_v21 = vrot.slane %v2608_v15, %v4056_v20  ;;  %v2631_v22 = vrot.slane %v2623_v17, %v4056_v20  ;;  %v2638_v12 = vrot.slane %v2624_v34, %v4056_v20  ;;  %v3647_v24 = vpop.f32.mrb[21].mxu0 }
 0x5e3   : > { %v2426_v23 = vpop.f32.mrb[22].mxu0  ;;  %v2571_v50 = vmul.f32 %v3809_v38, %v2423_v16 }
 0x5e4   : > { %v2711_v25 = vcombine.low %v2615_v9, %v2622_v21  ;;  %v3479_v26 = vcombine.high %v2615_v9, %v2622_v21  ;;  %v2727_v60 = vcombine.low %v2631_v22, %v2638_v12  ;;  %v3480_v27 = vcombine.high %v2631_v22, %v2638_v12  ;;  %v3648_v28 = vpop.f32.mrb[23].mxu0  ;;  %v3765_v22 = vld [vmem:[%s3960_s16 + $0x10] sm:$0xff]  }
 0x5e5   : > { %v2561_v31 = vpop.f32.mrb[36].mxu1  ;;  %3672 = vmatpush3.bf16.msra.mxu0 %v3765_v22  ;;  %v3769_v22 = vld [vmem:[%s3973_s5 + $0x10] sm:$0xff]  }
 0x5e6   : > { %v2574_v32 = vmul.f32 %v3807_v29, %v2561_v31  ;;  %v3665_v33 = vpop.f32.mrb[37].mxu1  ;;  %v2718_v35 = vrot.slane %v2711_v25, %v4050_v11  ;;  %v2726_v36 = vrot.slane %v3479_v26, %v4050_v11  ;;  %v2734_v37 = vrot.slane %v2727_v60, %v4050_v11  ;;  %3673 = vmatprep.subr.bf16.mxu0 %v3838_v1 }
 0x5e7   : > { %v2564_v39 = vpop.f32.mrb[38].mxu1  ;;  %v2742_v40 = vrot.slane %v3480_v27, %v4050_v11 }
 0x5e8   : > { %v2659_v41 = vcombine.low %v2572_v30, %v2574_v32  ;;  %v2660_v42 = vcombine.high %v2572_v30, %v2574_v32  ;;  %v3666_v43 = vpop.f32.mrb[39].mxu1  ;;  %v2744_v44 = vcombine.high %v2718_v35, %v2726_v36  ;;  %v2743_v45 = vcombine.low %v2718_v35, %v2726_v36  ;;  %v3766_v32 = vld [vmem:[%s3960_s16 + $0x18] sm:$0xff]  }
 0x5e9   : > { %v2515_v47 = vpop.f32.mrb[24].mxu0  ;;  %v2760_v48 = vcombine.high %v2734_v37, %v2742_v40  ;;  %v2759_v49 = vcombine.low %v2734_v37, %v2742_v40  ;;  %3674 = vmatpush3.bf16.msra.mxu0 %v3766_v32 }
 0x5ea   : > { %v2573_v51 = vmul.f32 %v3811_v46, %v2515_v47  ;;  %v3659_v53 = vpop.f32.mrb[25].mxu0  ;;  %v2758_v56 = vrot.slane %v2744_v44, %v4056_v20  ;;  %v4328_v52 = vrot.slane %v2743_v45, %v4056_v20  ;;  %v2667_v4 = vrot.slane %v2659_v41, %v4050_v11  ;;  %3691 = vmatprep.subr.bf16.mxu0 %v3838_v1 }
 0x5eb   : > { %v2518_v58 = vpop.f32.mrb[26].mxu0  ;;  %v2774_v59 = vrot.slane %v2760_v48, %v4056_v20  ;;  %v4331_v61 = vrot.slane %v2759_v49, %v4056_v20  ;;  %v2674_v5 = vrot.slane %v2660_v42, %v4050_v11 }
 0x5ec   : > { %v2643_v63 = vcombine.low %v2571_v50, %v2573_v51  ;;  %v2644_v0 = vcombine.high %v2571_v50, %v2573_v51  ;;  %v3660_v2 = vpop.f32.mrb[27].mxu0 }
 0x5ed   : > { %v2777_v54 = vcombine.low %v2758_v56, %v2774_v59  ;;  %v2775_v55 = vcombine.low %v4328_v52, %v4331_v61  ;;  %v2776_v3 = vcombine.high %v4328_v52, %v4331_v61  ;;  %v2778_v57 = vcombine.high %v2758_v56, %v2774_v59  ;;  %v3483_v59 = vld [vmem:[%s4488_s28] ss:$0 sm:$0xff] }
 0x5ee   : > { %v2651_v62 = vrot.slane %v2643_v63, %v4050_v11  ;;  %v2658_v6 = vrot.slane %v2644_v0, %v4050_v11  ;;  %v3824_v52 = vld [vmem:[%s4486_s21] sm:$0xff]  }
 0x5ef   : > { %v748_v61 = vunpack.c.l.bf16 %v3824_v52 }
 0x5f0   : > { %v2675_v7 = vcombine.low %v2651_v62, %v2667_v4  ;;  %v2676_v8 = vcombine.high %v2651_v62, %v2667_v4  ;;  %v2691_v10 = vcombine.low %v2658_v6, %v2674_v5  ;;  %v2692_v13 = vcombine.high %v2658_v6, %v2674_v5 }
 0x5f2   : > { %v2683_v14 = vrot.slane %v2675_v7, %v4056_v20  ;;  %v2690_v15 = vrot.slane %v2676_v8, %v4056_v20  ;;  %v2699_v17 = vrot.slane %v2691_v10, %v4056_v20  ;;  %v2706_v34 = vrot.slane %v2692_v13, %v4056_v20 }
 0x5f4   : > { %v2779_v19 = vcombine.low %v2683_v14, %v2690_v15  ;;  %v3481_v16 = vcombine.high %v2683_v14, %v2690_v15  ;;  %v2795_v9 = vcombine.low %v2699_v17, %v2706_v34  ;;  %v3482_v21 = vcombine.high %v2699_v17, %v2706_v34 }
 0x5f6   : > { %v2786_v12 = vrot.slane %v2779_v19, %v4050_v11  ;;  %v2794_v24 = vrot.slane %v3481_v16, %v4050_v11  ;;  %v2802_v23 = vrot.slane %v2795_v9, %v4050_v11  ;;  %v2810_v18 = vrot.slane %v3482_v21, %v4050_v11  ;;  %v3767_v9 = vld [vmem:[%s3973_s5] sm:$0xff]   ;;  %v3768_v21 = vld [vmem:[%s3973_s5 + $0x8] sm:$0xff]  }
 0x5f7   : > { %3680 = vmatpush3.bf16.msra.mxu1 %v3767_v9 }
 0x5f8   : > { %v2812_v25 = vcombine.high %v2786_v12, %v2794_v24  ;;  %v2828_v26 = vcombine.high %v2802_v23, %v2810_v18  ;;  %v2811_v60 = vcombine.low %v2786_v12, %v2794_v24  ;;  %v2827_v27 = vcombine.low %v2802_v23, %v2810_v18  ;;  %3681 = vmatprep.subr.bf16.mxu1 %v3838_v1  ;;  %v3770_v12 = vld [vmem:[%s3973_s5 + $0x18] sm:$0xff]   ;;  %s4489_s5 = scalar_lea.vmem %s4456_s8, %s3938_s23 }
 0x5fa   : > { %v2826_v28 = vrot.slane %v2812_v25, %v4056_v20  ;;  %v2842_v29 = vrot.slane %v2828_v26, %v4056_v20  ;;  %v2819_v30 = vrot.slane %v2811_v60, %v4056_v20  ;;  %v2835_v31 = vrot.slane %v2827_v27, %v4056_v20 }
 0x5fb   : > { %3682 = vmatpush3.bf16.msra.mxu1 %v3768_v21 }
 0x5fc   : > { %v2845_v33 = vcombine.low %v2826_v28, %v2842_v29  ;;  %v2844_v35 = vcombine.high %v2819_v30, %v2835_v31  ;;  %v2843_v36 = vcombine.low %v2819_v30, %v2835_v31  ;;  %v2846_v11 = vcombine.high %v2826_v28, %v2842_v29  ;;  %3683 = vmatprep.subr.bf16.mxu1 %v3838_v1  ;;  %v3489_v29 = vld [vmem:[%s4489_s5] ss:$0 sm:$0xff] }
 0x5fe   : > { %v3740_v37 = vpack.i.bf16 %v2845_v33, %v2777_v54  ;;  %v3735_v38 = vpack.i.bf16 %v2844_v35, %v2776_v3  ;;  %v3745_v39 = vpack.i.bf16 %v2846_v11, %v2778_v57  ;;  %v749_v54 = vunpack.c.h.bf16 %v3824_v52  ;;  %v3490_v33 = vld [vmem:[%s4490_s18] ss:$0 sm:$0xff] }
 0x5ff   : > { %3684 = vmatpush3.bf16.msra.mxu1 %v3769_v22 }
 0x600   : > { %3741 = vrot.lane.b32.xlu1 %v3740_v37, %s3842_s19  ;;  %3736 = vrot.lane.b32.xlu0 %v3735_v38, %s3843_s24  ;;  %v3771_v38 = vld [vmem:[%s3982_s6] sm:$0xff]  }
 0x601   : > { %3685 = vmatprep.subr.bf16.mxu1 %v3838_v1 }
 0x603   : > { %3686 = vmatpush3.bf16.msra.mxu1 %v3770_v12 }
 0x604   : > { %3746 = vrot.lane.b32.xlu1 %v3745_v39, %s3844_s1  ;;  %v3772_v39 = vld [vmem:[%s3982_s6 + $0x8] sm:$0xff]   ;;  %s4491_s1 = scalar_lea.vmem %s4459_s11, %s3938_s23 }
 0x672   : > { %v3742_v40 = vpop.permute.xlu1 %3741  ;;  %v3737_v41 = vpop.permute.xlu0 %3736 }
 0x673   : > { %v3739_v20 = vunpack.i.h.bf16 %v3737_v41  ;;  %v3738_v42 = vunpack.i.l.bf16 %v3737_v41  ;;  %v3744_v43 = vunpack.i.h.bf16 %v3742_v40  ;;  %v3743_v44 = vunpack.i.l.bf16 %v3742_v40  ;;  %v3773_v40 = vld [vmem:[%s3982_s6 + $0x10] sm:$0xff]   ;;  %v3774_v41 = vld [vmem:[%s3982_s6 + $0x18] sm:$0xff]  }
 0x675   : > { %v2871_v45 = vsel %vm1718_vm4, %v2775_v55, %v3738_v42  ;;  %v2872_v46 = vsel %vm1718_vm4, %v2843_v36, %v3739_v20  ;;  %v3775_v20 = vld [vmem:[%s3982_s6 + $0x20] sm:$0xff]   ;;  %v3776_v42 = vld [vmem:[%s3982_s6 + $0x28] sm:$0xff]  }
 0x676   : > { %v3747_v47 = vpop.permute.xlu1 %3746  ;;  %v2874_v50 = vsel %vm2873_vm7, %v2871_v45, %v3743_v44  ;;  %v2875_v51 = vsel %vm2873_vm7, %v2872_v46, %v3744_v43  ;;  %v3777_v43 = vld [vmem:[%s3982_s6 + $0x30] sm:$0xff]   ;;  %v3778_v44 = vld [vmem:[%s3982_s6 + $0x38] sm:$0xff]   ;;  %v3491_v45 = vld [vmem:[%s4491_s1] ss:$0 sm:$0xff] }
 0x677   : > { %v3749_v48 = vunpack.i.h.bf16 %v3747_v47  ;;  %v3748_v49 = vunpack.i.l.bf16 %v3747_v47 }
 0x679   : > { %v2877_v53 = vsel %vm2876_vm8, %v2874_v50, %v3748_v49  ;;  %v2878_v56 = vsel %vm2876_vm8, %v2875_v51, %v3749_v48 }
 0x67a   : > { %v2879_v58 = vpack.c.bf16 %v2878_v56, %v2877_v53 }
 0x67c   : > { %3676 = vmatmul.mubr.msk.bf16.vlgmr.msra.gmra.mrb[28].mxu0 %vm815_vm2, %v2879_v58 }
 0x67d   : > { %3707 = vmatprep.mubr.msk.bf16.mxu0 %vm3839_vm3, %v3838_v1  ;;  %3692 = vmatpush3.bf16.msra.mxu0 %v3771_v38 }
 0x67e   : > { %3693 = vmatprep.subr.bf16.mxu0 %v3838_v1 }
 0x681   : > { %3694 = vmatpush3.bf16.msra.mxu0 %v3772_v39  ;;  %v3507_v39 = vld [vmem:[%s681_s30] ss:$0 sm:$0xff] }
 0x682   : > { %3695 = vmatprep.subr.bf16.mxu0 %v3838_v1 }
 0x685   : > { %3696 = vmatpush3.bf16.msra.mxu0 %v3773_v40 }
 0x686   : > { %3697 = vmatprep.subr.bf16.mxu0 %v3838_v1 }
 0x689   : > { %3698 = vmatpush3.bf16.msra.mxu0 %v3774_v41 }
 0x68a   : > { %3699 = vmatprep.subr.bf16.mxu0 %v3838_v1 }
 0x68d   : > { %3700 = vmatpush3.bf16.msra.mxu0 %v3775_v20 }
 0x68e   : > { %3701 = vmatprep.subr.bf16.mxu0 %v3838_v1 }
 0x691   : > { %3702 = vmatpush3.bf16.msra.mxu0 %v3776_v42 }
 0x692   : > { %3703 = vmatprep.subr.bf16.mxu0 %v3838_v1 }
 0x695   : > { %3704 = vmatpush3.bf16.msra.mxu0 %v3777_v43 }
 0x696   : > { %3705 = vmatprep.subr.bf16.mxu0 %v3838_v1 }
 0x699   : > { %3706 = vmatpush3.bf16.msra.mxu0 %v3778_v44 }
 0x74f   : > { %v2956_v63 = vpop.f32.mrb[28].mxu0 }
 0x750   : > { %v2957_v0 = vadd.f32 %v3483_v59, %v2956_v63  ;;  %v3677_v2 = vpop.f32.mrb[29].mxu0 }
 0x751   : > { %v2959_v55 = vpop.f32.mrb[30].mxu0 }
 0x752   : > { %v2960_v3 = vadd.f32 %v3483_v59, %v2959_v55  ;;  %v3678_v57 = vpop.f32.mrb[31].mxu0  ;;  %v2963_v4 = vadd.f32 %v2957_v0, %v748_v61 }
 0x754   : > { %v2967_v5 = vsel %vm815_vm2, %v2963_v4, 0.0  ;;  %v2964_v62 = vadd.f32 %v2960_v3, %v749_v54 }
 0x755   : > { %2968 = vadd.xlane.f32.xlu0 %v2967_v5 }
 0x756   : > { %v2970_v6 = vsel %vm815_vm2, %v2964_v62, 0.0 }
 0x757   : > { %2971 = vadd.xlane.f32.xlu1 %v2970_v6 }
 0x7e2   : > { %v2969_v7 = vpop.xlane.xlu0 %2968 }
 0x7e3   : > { %v2974_v8 = vmul.f32 0.015625, %v2969_v7 }
 0x7e4   : > { %v2972_v10 = vpop.xlane.xlu1 %2971 }
 0x7e5   : > { %v2976_v13 = vsub.f32 %v2963_v4, %v2974_v8  ;;  %v2975_v14 = vmul.f32 0.015625, %v2972_v10  ;;  %v3497_v8 = vld [vmem:[%s675_s26] ss:$0 sm:$0xff] }
 0x7e7   : > { %v2977_v15 = vsub.f32 %v2964_v62, %v2975_v14  ;;  %v2978_v17 = vmul.f32 %v2976_v13, %v2976_v13 }
 0x7e9   : > { %v2980_v34 = vsel %vm815_vm2, %v2978_v17, 0.0  ;;  %v2979_v19 = vmul.f32 %v2977_v15, %v2977_v15 }
 0x7ea   : > { %2981 = vadd.xlane.f32.xlu0 %v2980_v34 }
 0x7eb   : > { %v2983_v16 = vsel %vm815_vm2, %v2979_v19, 0.0 }
 0x7ee   : > { %2984 = vadd.xlane.f32.xlu0 %v2983_v16 }
 0x877   : > { %v2982_v24 = vpop.xlane.xlu0 %2981 }
 0x878   : > { %v2986_v23 = vmul.f32 0.015625, %v2982_v24 }
 0x87a   : > { %v2988_v18 = vadd.f32 1e-05, %v2986_v23 }
 0x87b   : > { %v2985_v25 = vpop.xlane.xlu0 %2984 }
 0x87c   : > { %3812 = vrsqrt.f32 %v2988_v18  ;;  %v2987_v26 = vmul.f32 0.015625, %v2985_v25 }
 0x87e   : > { %v2989_v60 = vadd.f32 1e-05, %v2987_v26 }
 0x880   : > { %3814 = vrsqrt.f32 %v2989_v60 }
 0x886   : > { %v3813_v27 = vpop.eup %3812 }
 0x887   : > { %v2992_v28 = vmul.f32 %v3813_v27, %v2976_v13 }
 0x889   : > { %v3000_v31 = vmul.f32 %v3489_v29, %v2992_v28 }
 0x88a   : > { %v3815_v30 = vpop.eup %3814 }
 0x88b   : > { %v2993_v32 = vmul.f32 %v3815_v30, %v2977_v15  ;;  %v4391_v36 = vadd.f32 %v3490_v33, %v3000_v31 }
 0x88d   : > { %v3001_v35 = vmul.f32 %v3489_v29, %v2993_v32 }
 0x88f   : > { %v4393_v11 = vadd.f32 %v3490_v33, %v3001_v35 }
 0x891   : > { %v3010_v37 = vpack.c.bf16 %v4393_v11, %v4391_v36 }
 0x893   : > { %3688 = vmatmul.mubr.msk.bf16.vlgmr.msra.gmra.mrb[40].mxu1 %vm815_vm2, %v3010_v37 }
 0x966   : > { %v3087_v46 = vpop.f32.mrb[40].mxu1 }
 0x967   : > { %v3088_v47 = vadd.f32 %v3491_v45, %v3087_v46  ;;  %v3689_v48 = vpop.f32.mrb[41].mxu1 }
 0x968   : > { %v3090_v49 = vpop.f32.mrb[42].mxu1 }
 0x969   : > { %v3096_v50 = vmul.f32 0.044715, %v3088_v47  ;;  %v3091_v51 = vadd.f32 %v3491_v45, %v3090_v49  ;;  %v3690_v53 = vpop.f32.mrb[43].mxu1  ;;  %v3094_v57 = vmul.f32 0.5, %v3088_v47 }
 0x96b   : > { %v3098_v56 = vmul.f32 %v3096_v50, %v3088_v47  ;;  %v3097_v58 = vmul.f32 0.044715, %v3091_v51  ;;  %v3095_v4 = vmul.f32 0.5, %v3091_v51 }
 0x96d   : > { %v3100_v59 = vmul.f32 %v3098_v56, %v3088_v47  ;;  %v3099_v52 = vmul.f32 %v3097_v58, %v3091_v51 }
 0x96f   : > { %v3102_v61 = vadd.f32 %v3100_v59, %v3088_v47  ;;  %v3101_v63 = vmul.f32 %v3099_v52, %v3091_v51 }
 0x971   : > { %v3104_v1 = vmul.f32 0.7978846, %v3102_v61  ;;  %v3103_v0 = vadd.f32 %v3101_v63, %v3091_v51 }
 0x973   : > { %3816 = vtanh.f32 %v3104_v1  ;;  %v3105_v2 = vmul.f32 0.7978846, %v3103_v0 }
 0x975   : > { %3818 = vtanh.f32 %v3105_v2 }
 0x97d   : > { %v3817_v54 = vpop.eup %3816 }
 0x97e   : > { %v3108_v55 = vadd.f32 1.0, %v3817_v54 }
 0x97f   : > { %v3819_v3 = vpop.eup %3818 }
 0x980   : > { %v3109_v5 = vadd.f32 1.0, %v3819_v3  ;;  %v3110_v62 = vmul.f32 %v3108_v55, %v3094_v57 }
 0x982   : > { %v3111_v6 = vmul.f32 %v3109_v5, %v3095_v4 }
 0x984   : > { %v3112_v7 = vpack.c.bf16 %v3111_v6, %v3110_v62 }
 0x986   : > { %3708 = vmatmul.mubr.bf16.vlgmr.msra.gmra.mrb[32].mxu0 %v3112_v7 }
 0xa59   : > { %v3218_v10 = vpop.f32.mrb[32].mxu0 }
 0xa5a   : > { %v3219_v13 = vadd.f32 %v3497_v8, %v3218_v10  ;;  %v3709_v14 = vpop.f32.mrb[33].mxu0 }
 0xa5b   : > { %v3221_v15 = vpop.f32.mrb[34].mxu0 }
 0xa5c   : > { %v3222_v17 = vadd.f32 %v3497_v8, %v3221_v15  ;;  %v3710_v34 = vpop.f32.mrb[35].mxu0  ;;  %v3225_v19 = vadd.f32 %v3219_v13, %v4391_v36 }
 0xa5e   : > { %v3229_v16 = vsel %vm815_vm2, %v3225_v19, 0.0  ;;  %v3226_v9 = vadd.f32 %v3222_v17, %v4393_v11  ;;  %v3506_v11 = vld [vmem:[%s678_s29] ss:$0 sm:$0xff] }
 0xa5f   : > { %3230 = vadd.xlane.f32.xlu1 %v3229_v16 }
 0xa60   : > { %v3232_v21 = vsel %vm815_vm2, %v3226_v9, 0.0 }
 0xa61   : > { %3233 = vadd.xlane.f32.xlu0 %v3232_v21 }
 0xaec   : > { %v3231_v22 = vpop.xlane.xlu1 %3230 }
 0xaed   : > { %v3235_v12 = vmul.f32 0.015625, %v3231_v22 }
 0xaee   : > { %v3234_v24 = vpop.xlane.xlu0 %3233 }
 0xaef   : > { %v3237_v23 = vsub.f32 %v3225_v19, %v3235_v12  ;;  %v3236_v18 = vmul.f32 0.015625, %v3234_v24 }
 0xaf1   : > { %v3238_v25 = vsub.f32 %v3226_v9, %v3236_v18  ;;  %v3239_v26 = vmul.f32 %v3237_v23, %v3237_v23 }
 0xaf3   : > { %v3241_v60 = vsel %vm815_vm2, %v3239_v26, 0.0  ;;  %v3240_v27 = vmul.f32 %v3238_v25, %v3238_v25 }
 0xaf4   : > { %3242 = vadd.xlane.f32.xlu1 %v3241_v60 }
 0xaf5   : > { %v3244_v28 = vsel %vm815_vm2, %v3240_v27, 0.0 }
 0xaf6   : > { %3245 = vadd.xlane.f32.xlu0 %v3244_v28 }
 0xb81   : > { %v3243_v29 = vpop.xlane.xlu1 %3242 }
 0xb82   : > { %v3247_v30 = vmul.f32 0.015625, %v3243_v29 }
 0xb83   : > { %v3246_v31 = vpop.xlane.xlu0 %3245 }
 0xb84   : > { %v3249_v32 = vadd.f32 1e-05, %v3247_v30  ;;  %v3248_v33 = vmul.f32 0.015625, %v3246_v31 }
 0xb86   : > { %3820 = vrsqrt.f32 %v3249_v32  ;;  %v3250_v35 = vadd.f32 1e-05, %v3248_v33 }
 0xb88   : > { %3822 = vrsqrt.f32 %v3250_v35 }
 0xb90   : > { %v3821_v36 = vpop.eup %3820 }
 0xb91   : > { %v3253_v37 = vmul.f32 %v3821_v36, %v3237_v23 }
 0xb92   : > { %v3823_v38 = vpop.eup %3822 }
 0xb93   : > { %v3261_v40 = vmul.f32 %v3506_v11, %v3253_v37  ;;  %v3254_v41 = vmul.f32 %v3823_v38, %v3238_v25 }
 0xb95   : > { %v3269_v20 = vadd.f32 %v3507_v39, %v3261_v40  ;;  %v3262_v42 = vmul.f32 %v3506_v11, %v3254_v41 }
 0xb97   : > { %v3518_v43 = vpack.c.bf16 %v3269_v20, %v3269_v20  ;;  %v3270_v44 = vadd.f32 %v3507_v39, %v3262_v42 }
 0xb99   : > { %3280 = vst.msk [vmem:[%s4486_s21] sm:$0xf] %vm3279_vm9, %v3518_v43  ;;  %v3519_v45 = vpack.c.bf16 %v3270_v44, %v3270_v44 }
 0xb9b   : > { %3281 = vst.msk [vmem:[%s4486_s21 + $0x4] sm:$0xf] %vm3279_vm9, %v3519_v45 }
 0xb9c PF: > { %s4492_s5 = sld [smem:[#allocation2_spill]] }
 0xba2   : > { %s26_s21 = sadd.s32 1, %s4492_s5  }
 0xba3   : > { %p23_p5 = scmp.ge.s32.totalorder %s26_s21, 4  }
 0xba5   :  { %25 = sbr.rel (!%p23_p5) target bundleno = 9 (0x9), region = 147 }

</bundles_post_ra>
